<compile_context>
chip_gen: v6e
topology: v6e:2x2x1
jax: 0.10.0
libtpu: 0.0.40
codegen_flags: <defaults>
</compile_context>

<pallas_src>
import jax
import jax.numpy as jnp
from jax.experimental import pallas as pl
from jax.experimental.pallas import tpu as pltpu


def _fused_rows_kernel(*refs):
    """refs = (z_ij_ref, row_ref_0 .. row_ref_{TI-1}, w_ref, b_ref, out_ref).

    z_ij_ref : (TI, TJ, C)  block z[b, i_tile, j_tile, :]
    row_ref_r: (TJ, C)      block z[b, j_tile, i_tile_start + r, :]
    w_ref    : (C, nb), b_ref: (1, nb), out_ref: (TI, TJ, nb)
    """
    z_ij_ref = refs[0]
    w_ref, b_ref, out_ref = refs[-3], refs[-2], refs[-1]
    row_refs = refs[1:-3]

    w = w_ref[...]          # (C, nb) — hoisted, fetched once per step
    bias = b_ref[...]       # (1, nb) float32

    for r, zji_ref in enumerate(row_refs):
        row = z_ij_ref[r] + zji_ref[...]                       # (TJ, C)
        y = jnp.dot(row, w, preferred_element_type=jnp.float32) + bias
        out_ref[r] = y.astype(out_ref.dtype)


def _presym_kernel(z_ref, zt_ref, w_ref, b_ref, out_ref):
    """Fallback kernel: zt is an XLA-side transposed copy of z (same blocking)."""
    w = w_ref[...]
    bias = b_ref[...]
    for r in range(z_ref.shape[0]):
        row = z_ref[r] + zt_ref[r]                             # (TJ, C)
        y = jnp.dot(row, w, preferred_element_type=jnp.float32) + bias
        out_ref[r] = y.astype(out_ref.dtype)


def _pick_tile_j(n):
    for t in (512, 384, 256, 128, 64, 32, 16, 8):
        if n % t == 0:
            return t
    return n  # n not a multiple of 8 -> single full-width tile (full-dim exemption)


def distogram_forward(z, weight, bias, *, tile_i=None, tile_j=None):
    """Fused DistogramModule.forward: (z + z^T_tokens) @ weight.T + bias.

    z      : [B, N, N, C] float array
    weight : [num_bins, C]   (PyTorch nn.Linear layout)
    bias   : [num_bins]
    returns: [B, N, N, num_bins] in z.dtype
    """
    B, N, N2, C = z.shape
    assert N == N2, "pairwise embedding must be square over tokens"
    nb = weight.shape[0]

    if tile_j is None:
        tile_j = _pick_tile_j(N)
    if tile_i is None:
        tile_i = 8 if N % 8 == 0 else 1
    assert N % tile_i == 0 and N % tile_j == 0, "tiles must divide N"

    # XLA-side glue (tiny, one-time): weight transpose + bias reshape.
    w_t = weight.T.astype(z.dtype)                     # (C, nb)
    bias2d = bias.astype(jnp.float32).reshape(1, nb)   # (1, nb)

    out_shape = jax.ShapeDtypeStruct((B, N, N, nb), z.dtype)
    grid = (B, N // tile_i, N // tile_j)

    z_ij_spec = pl.BlockSpec((None, tile_i, tile_j, C), lambda b, i, j: (b, i, j, 0))
    out_spec = pl.BlockSpec((None, tile_i, tile_j, nb), lambda b, i, j: (b, i, j, 0))
    w_spec = pl.BlockSpec((C, nb), lambda b, i, j: (0, 0))
    b_spec = pl.BlockSpec((1, nb), lambda b, i, j: (0, 0))

    if C % 128 == 0:
        # Fast path: fetch the transposed operand directly from HBM via the
        # index map.  z is viewed as [B, N, N*C] (metadata-only reshape) so each
        # transposed row z[b, j_tile, i_row, :] is a lane-aligned (tile_j, C)
        # slab whose last block dim (C) is a multiple of 128.
        z_rows_view = z.reshape(B, N, N * C)
        row_specs = [
            pl.BlockSpec(
                (None, tile_j, C),
                lambda b, i, j, r=r: (b, j, i * tile_i + r),
            )
            for r in range(tile_i)
        ]
        kernel = _fused_rows_kernel
        in_specs = [z_ij_spec] + row_specs + [w_spec, b_spec]
        args = (z,) + (z_rows_view,) * tile_i + (w_t, bias2d)
    else:
        # Fallback (token_z not lane-aligned): symmetrize against an XLA-side
        # transposed copy of z; the add + linear head remain fused in-kernel.
        zt = jnp.swapaxes(z, 1, 2)
        kernel = _presym_kernel
        in_specs = [z_ij_spec, z_ij_spec, w_spec, b_spec]
        args = (z, zt, w_t, bias2d)

    return pl.pallas_call(
        kernel,
        out_shape=out_shape,
        grid_spec=pltpu.PrefetchScalarGridSpec(
            num_scalar_prefetch=0,
            grid=grid,
            in_specs=in_specs,
            out_specs=out_spec,
        ),
        compiler_params=pltpu.CompilerParams(
            dimension_semantics=("parallel", "parallel", "parallel")
        ),
    )(*args)


def _reference(z, weight, bias):
    zs = z + jnp.swapaxes(z, 1, 2)
    return (
        jnp.einsum("bijc,nc->bijn", zs, weight,
                   precision=jax.lax.Precision.HIGHEST)
        + bias
    )


if __name__ == "__main__":
    key = jax.random.PRNGKey(0)
    kz, kw, kb, kz2, kw2, kb2 = jax.random.split(key, 6)

    def check(z, weight, bias, **tile_kwargs):
        out = jax.block_until_ready(
            distogram_forward(z, weight, bias, **tile_kwargs)
        )
        ref = _reference(z, weight, bias)
        assert out.shape == ref.shape
        err = jnp.max(jnp.abs(out - ref)) / (jnp.max(jnp.abs(ref)) + 1e-6)
        assert float(err) < 2e-2, f"max relative error too large: {float(err)}"

    # Primary: Boltz-like channel width kept at small token count.
    # token_z = 128 exercises the fused lane-dense fast path.
    B, N, token_z, num_bins = 2, 16, 128, 64
    z = jax.random.normal(kz, (B, N, N, token_z), dtype=jnp.float32)
    w = jax.random.normal(kw, (num_bins, token_z), dtype=jnp.float32)
    b = jax.random.normal(kb, (num_bins,), dtype=jnp.float32)
    check(z, w, b)                          # default tiles (tile_i=8, tile_j=16)
    check(z, w, b, tile_i=8, tile_j=8)      # multi-tile grid in both token dims

    # Secondary: token_z not a multiple of 128 -> fallback path (still fused
    # add + linear in-kernel, transposed copy provided by XLA).
    token_z2 = 32
    z2 = jax.random.normal(kz2, (B, N, N, token_z2), dtype=jnp.float32)
    w2 = jax.random.normal(kw2, (num_bins, token_z2), dtype=jnp.float32)
    b2 = jax.random.normal(kb2, (num_bins,), dtype=jnp.float32)
    check(z2, w2, b2)

    print("KERNEL_OK")
</pallas_src>

<mosaic_0001>
module attributes {stable_mosaic.version = 11 : i64} {
  func.func @_fused_rows_kernel(%arg0: i32, %arg1: i32, %arg2: i32, %arg3: memref<1x8x16x128xf32, #tpu.memory_space<vmem>>, %arg4: memref<1x16x128xf32, #tpu.memory_space<vmem>>, %arg5: memref<1x16x128xf32, #tpu.memory_space<vmem>>, %arg6: memref<1x16x128xf32, #tpu.memory_space<vmem>>, %arg7: memref<1x16x128xf32, #tpu.memory_space<vmem>>, %arg8: memref<1x16x128xf32, #tpu.memory_space<vmem>>, %arg9: memref<1x16x128xf32, #tpu.memory_space<vmem>>, %arg10: memref<1x16x128xf32, #tpu.memory_space<vmem>>, %arg11: memref<1x16x128xf32, #tpu.memory_space<vmem>>, %arg12: memref<128x64xf32, #tpu.memory_space<vmem>>, %arg13: memref<1x64xf32, #tpu.memory_space<vmem>>, %arg14: memref<1x8x16x64xf32, #tpu.memory_space<vmem>>) attributes {dimension_semantics = [#tpu.dimension_semantics<parallel>, #tpu.dimension_semantics<parallel>, #tpu.dimension_semantics<parallel>], iteration_bounds = array<i64: 2, 2, 1>, scalar_prefetch = 0 : i64, scratch_operands = 0 : i64, tpu.core_type = #tpu.core_type<tc>, window_params = [{transform_indices = @transform_0, window_bounds = array<i64: 1, 8, 16, 128>}, {transform_indices = @transform_1, window_bounds = array<i64: 1, 16, 128>}, {transform_indices = @transform_2, window_bounds = array<i64: 1, 16, 128>}, {transform_indices = @transform_3, window_bounds = array<i64: 1, 16, 128>}, {transform_indices = @transform_4, window_bounds = array<i64: 1, 16, 128>}, {transform_indices = @transform_5, window_bounds = array<i64: 1, 16, 128>}, {transform_indices = @transform_6, window_bounds = array<i64: 1, 16, 128>}, {transform_indices = @transform_7, window_bounds = array<i64: 1, 16, 128>}, {transform_indices = @transform_8, window_bounds = array<i64: 1, 16, 128>}, {pipeline_mode = #tpu.pipeline_mode<synchronous>, transform_indices = @transform_9, window_bounds = array<i64: 128, 64>}, {pipeline_mode = #tpu.pipeline_mode<synchronous>, transform_indices = @transform_10, window_bounds = array<i64: 1, 64>}, {transform_indices = @transform_11, window_bounds = array<i64: 1, 8, 16, 64>}]} {
    %c0 = arith.constant 0 : index
    %c0_0 = arith.constant 0 : index
    %0 = vector.load %arg12[%c0, %c0_0] : memref<128x64xf32, #tpu.memory_space<vmem>>, vector<128x64xf32>
    %c0_1 = arith.constant 0 : index
    %c0_2 = arith.constant 0 : index
    %1 = vector.load %arg13[%c0_1, %c0_2] : memref<1x64xf32, #tpu.memory_space<vmem>>, vector<1x64xf32>
    %c0_3 = arith.constant 0 : index
    %c0_4 = arith.constant 0 : index
    %c0_5 = arith.constant 0 : index
    %c0_6 = arith.constant 0 : index
    %2 = vector.load %arg3[%c0_3, %c0_4, %c0_5, %c0_6] : memref<1x8x16x128xf32, #tpu.memory_space<vmem>>, vector<1x1x16x128xf32>
    %3 = vector.shape_cast %2 : vector<1x1x16x128xf32> to vector<16x128xf32>
    %c0_7 = arith.constant 0 : index
    %c0_8 = arith.constant 0 : index
    %c0_9 = arith.constant 0 : index
    %4 = vector.load %arg4[%c0_7, %c0_8, %c0_9] : memref<1x16x128xf32, #tpu.memory_space<vmem>>, vector<1x16x128xf32>
    %5 = vector.shape_cast %4 : vector<1x16x128xf32> to vector<16x128xf32>
    %6 = arith.addf %3, %5 : vector<16x128xf32>
    %cst = arith.constant dense<0.000000e+00> : vector<16x64xf32>
    %7 = tpu.matmul %6, %0, %cst {dimension_numbers = #tpu.dot_dimension_numbers<[1], [0], [0], [1], [0, 0, 1, 1], [], []>} : vector<16x128xf32>, vector<128x64xf32>, vector<16x64xf32> -> vector<16x64xf32>
    %8 = vector.broadcast %1 : vector<1x64xf32> to vector<16x64xf32>
    %9 = arith.addf %7, %8 : vector<16x64xf32>
    %c0_10 = arith.constant 0 : index
    %c0_11 = arith.constant 0 : index
    %c0_12 = arith.constant 0 : index
    %c0_13 = arith.constant 0 : index
    %10 = vector.load %arg14[%c0_10, %c0_11, %c0_12, %c0_13] : memref<1x8x16x64xf32, #tpu.memory_space<vmem>>, vector<1x1x16x64xf32>
    %11 = vector.shape_cast %10 : vector<1x1x16x64xf32> to vector<16x64xf32>
    %12 = vector.shape_cast %9 : vector<16x64xf32> to vector<1x1x16x64xf32>
    tpu.vector_store %arg14[%c0_10, %c0_11, %c0_12, %c0_13], %12 {strides = array<i32>} : memref<1x8x16x64xf32, #tpu.memory_space<vmem>>, vector<1x1x16x64xf32>,
    %c0_14 = arith.constant 0 : index
    %c1 = arith.constant 1 : index
    %c0_15 = arith.constant 0 : index
    %c0_16 = arith.constant 0 : index
    %13 = vector.load %arg3[%c0_14, %c1, %c0_15, %c0_16] : memref<1x8x16x128xf32, #tpu.memory_space<vmem>>, vector<1x1x16x128xf32>
    %14 = vector.shape_cast %13 : vector<1x1x16x128xf32> to vector<16x128xf32>
    %c0_17 = arith.constant 0 : index
    %c0_18 = arith.constant 0 : index
    %c0_19 = arith.constant 0 : index
    %15 = vector.load %arg5[%c0_17, %c0_18, %c0_19] : memref<1x16x128xf32, #tpu.memory_space<vmem>>, vector<1x16x128xf32>
    %16 = vector.shape_cast %15 : vector<1x16x128xf32> to vector<16x128xf32>
    %17 = arith.addf %14, %16 : vector<16x128xf32>
    %cst_20 = arith.constant dense<0.000000e+00> : vector<16x64xf32>
    %18 = tpu.matmul %17, %0, %cst_20 {dimension_numbers = #tpu.dot_dimension_numbers<[1], [0], [0], [1], [0, 0, 1, 1], [], []>} : vector<16x128xf32>, vector<128x64xf32>, vector<16x64xf32> -> vector<16x64xf32>
    %19 = vector.broadcast %1 : vector<1x64xf32> to vector<16x64xf32>
    %20 = arith.addf %18, %19 : vector<16x64xf32>
    %c0_21 = arith.constant 0 : index
    %c1_22 = arith.constant 1 : index
    %c0_23 = arith.constant 0 : index
    %c0_24 = arith.constant 0 : index
    %21 = vector.load %arg14[%c0_21, %c1_22, %c0_23, %c0_24] : memref<1x8x16x64xf32, #tpu.memory_space<vmem>>, vector<1x1x16x64xf32>
    %22 = vector.shape_cast %21 : vector<1x1x16x64xf32> to vector<16x64xf32>
    %23 = vector.shape_cast %20 : vector<16x64xf32> to vector<1x1x16x64xf32>
    tpu.vector_store %arg14[%c0_21, %c1_22, %c0_23, %c0_24], %23 {strides = array<i32>} : memref<1x8x16x64xf32, #tpu.memory_space<vmem>>, vector<1x1x16x64xf32>,
    %c0_25 = arith.constant 0 : index
    %c2 = arith.constant 2 : index
    %c0_26 = arith.constant 0 : index
    %c0_27 = arith.constant 0 : index
    %24 = vector.load %arg3[%c0_25, %c2, %c0_26, %c0_27] : memref<1x8x16x128xf32, #tpu.memory_space<vmem>>, vector<1x1x16x128xf32>
    %25 = vector.shape_cast %24 : vector<1x1x16x128xf32> to vector<16x128xf32>
    %c0_28 = arith.constant 0 : index
    %c0_29 = arith.constant 0 : index
    %c0_30 = arith.constant 0 : index
    %26 = vector.load %arg6[%c0_28, %c0_29, %c0_30] : memref<1x16x128xf32, #tpu.memory_space<vmem>>, vector<1x16x128xf32>
    %27 = vector.shape_cast %26 : vector<1x16x128xf32> to vector<16x128xf32>
    %28 = arith.addf %25, %27 : vector<16x128xf32>
    %cst_31 = arith.constant dense<0.000000e+00> : vector<16x64xf32>
    %29 = tpu.matmul %28, %0, %cst_31 {dimension_numbers = #tpu.dot_dimension_numbers<[1], [0], [0], [1], [0, 0, 1, 1], [], []>} : vector<16x128xf32>, vector<128x64xf32>, vector<16x64xf32> -> vector<16x64xf32>
    %30 = vector.broadcast %1 : vector<1x64xf32> to vector<16x64xf32>
    %31 = arith.addf %29, %30 : vector<16x64xf32>
    %c0_32 = arith.constant 0 : index
    %c2_33 = arith.constant 2 : index
    %c0_34 = arith.constant 0 : index
    %c0_35 = arith.constant 0 : index
    %32 = vector.load %arg14[%c0_32, %c2_33, %c0_34, %c0_35] : memref<1x8x16x64xf32, #tpu.memory_space<vmem>>, vector<1x1x16x64xf32>
    %33 = vector.shape_cast %32 : vector<1x1x16x64xf32> to vector<16x64xf32>
    %34 = vector.shape_cast %31 : vector<16x64xf32> to vector<1x1x16x64xf32>
    tpu.vector_store %arg14[%c0_32, %c2_33, %c0_34, %c0_35], %34 {strides = array<i32>} : memref<1x8x16x64xf32, #tpu.memory_space<vmem>>, vector<1x1x16x64xf32>,
    %c0_36 = arith.constant 0 : index
    %c3 = arith.constant 3 : index
    %c0_37 = arith.constant 0 : index
    %c0_38 = arith.constant 0 : index
    %35 = vector.load %arg3[%c0_36, %c3, %c0_37, %c0_38] : memref<1x8x16x128xf32, #tpu.memory_space<vmem>>, vector<1x1x16x128xf32>
    %36 = vector.shape_cast %35 : vector<1x1x16x128xf32> to vector<16x128xf32>
    %c0_39 = arith.constant 0 : index
    %c0_40 = arith.constant 0 : index
    %c0_41 = arith.constant 0 : index
    %37 = vector.load %arg7[%c0_39, %c0_40, %c0_41] : memref<1x16x128xf32, #tpu.memory_space<vmem>>, vector<1x16x128xf32>
    %38 = vector.shape_cast %37 : vector<1x16x128xf32> to vector<16x128xf32>
    %39 = arith.addf %36, %38 : vector<16x128xf32>
    %cst_42 = arith.constant dense<0.000000e+00> : vector<16x64xf32>
    %40 = tpu.matmul %39, %0, %cst_42 {dimension_numbers = #tpu.dot_dimension_numbers<[1], [0], [0], [1], [0, 0, 1, 1], [], []>} : vector<16x128xf32>, vector<128x64xf32>, vector<16x64xf32> -> vector<16x64xf32>
    %41 = vector.broadcast %1 : vector<1x64xf32> to vector<16x64xf32>
    %42 = arith.addf %40, %41 : vector<16x64xf32>
    %c0_43 = arith.constant 0 : index
    %c3_44 = arith.constant 3 : index
    %c0_45 = arith.constant 0 : index
    %c0_46 = arith.constant 0 : index
    %43 = vector.load %arg14[%c0_43, %c3_44, %c0_45, %c0_46] : memref<1x8x16x64xf32, #tpu.memory_space<vmem>>, vector<1x1x16x64xf32>
    %44 = vector.shape_cast %43 : vector<1x1x16x64xf32> to vector<16x64xf32>
    %45 = vector.shape_cast %42 : vector<16x64xf32> to vector<1x1x16x64xf32>
    tpu.vector_store %arg14[%c0_43, %c3_44, %c0_45, %c0_46], %45 {strides = array<i32>} : memref<1x8x16x64xf32, #tpu.memory_space<vmem>>, vector<1x1x16x64xf32>,
    %c0_47 = arith.constant 0 : index
    %c4 = arith.constant 4 : index
    %c0_48 = arith.constant 0 : index
    %c0_49 = arith.constant 0 : index
    %46 = vector.load %arg3[%c0_47, %c4, %c0_48, %c0_49] : memref<1x8x16x128xf32, #tpu.memory_space<vmem>>, vector<1x1x16x128xf32>
    %47 = vector.shape_cast %46 : vector<1x1x16x128xf32> to vector<16x128xf32>
    %c0_50 = arith.constant 0 : index
    %c0_51 = arith.constant 0 : index
    %c0_52 = arith.constant 0 : index
    %48 = vector.load %arg8[%c0_50, %c0_51, %c0_52] : memref<1x16x128xf32, #tpu.memory_space<vmem>>, vector<1x16x128xf32>
    %49 = vector.shape_cast %48 : vector<1x16x128xf32> to vector<16x128xf32>
    %50 = arith.addf %47, %49 : vector<16x128xf32>
    %cst_53 = arith.constant dense<0.000000e+00> : vector<16x64xf32>
    %51 = tpu.matmul %50, %0, %cst_53 {dimension_numbers = #tpu.dot_dimension_numbers<[1], [0], [0], [1], [0, 0, 1, 1], [], []>} : vector<16x128xf32>, vector<128x64xf32>, vector<16x64xf32> -> vector<16x64xf32>
    %52 = vector.broadcast %1 : vector<1x64xf32> to vector<16x64xf32>
    %53 = arith.addf %51, %52 : vector<16x64xf32>
    %c0_54 = arith.constant 0 : index
    %c4_55 = arith.constant 4 : index
    %c0_56 = arith.constant 0 : index
    %c0_57 = arith.constant 0 : index
    %54 = vector.load %arg14[%c0_54, %c4_55, %c0_56, %c0_57] : memref<1x8x16x64xf32, #tpu.memory_space<vmem>>, vector<1x1x16x64xf32>
    %55 = vector.shape_cast %54 : vector<1x1x16x64xf32> to vector<16x64xf32>
    %56 = vector.shape_cast %53 : vector<16x64xf32> to vector<1x1x16x64xf32>
    tpu.vector_store %arg14[%c0_54, %c4_55, %c0_56, %c0_57], %56 {strides = array<i32>} : memref<1x8x16x64xf32, #tpu.memory_space<vmem>>, vector<1x1x16x64xf32>,
    %c0_58 = arith.constant 0 : index
    %c5 = arith.constant 5 : index
    %c0_59 = arith.constant 0 : index
    %c0_60 = arith.constant 0 : index
    %57 = vector.load %arg3[%c0_58, %c5, %c0_59, %c0_60] : memref<1x8x16x128xf32, #tpu.memory_space<vmem>>, vector<1x1x16x128xf32>
    %58 = vector.shape_cast %57 : vector<1x1x16x128xf32> to vector<16x128xf32>
    %c0_61 = arith.constant 0 : index
    %c0_62 = arith.constant 0 : index
    %c0_63 = arith.constant 0 : index
    %59 = vector.load %arg9[%c0_61, %c0_62, %c0_63] : memref<1x16x128xf32, #tpu.memory_space<vmem>>, vector<1x16x128xf32>
    %60 = vector.shape_cast %59 : vector<1x16x128xf32> to vector<16x128xf32>
    %61 = arith.addf %58, %60 : vector<16x128xf32>
    %cst_64 = arith.constant dense<0.000000e+00> : vector<16x64xf32>
    %62 = tpu.matmul %61, %0, %cst_64 {dimension_numbers = #tpu.dot_dimension_numbers<[1], [0], [0], [1], [0, 0, 1, 1], [], []>} : vector<16x128xf32>, vector<128x64xf32>, vector<16x64xf32> -> vector<16x64xf32>
    %63 = vector.broadcast %1 : vector<1x64xf32> to vector<16x64xf32>
    %64 = arith.addf %62, %63 : vector<16x64xf32>
    %c0_65 = arith.constant 0 : index
    %c5_66 = arith.constant 5 : index
    %c0_67 = arith.constant 0 : index
    %c0_68 = arith.constant 0 : index
    %65 = vector.load %arg14[%c0_65, %c5_66, %c0_67, %c0_68] : memref<1x8x16x64xf32, #tpu.memory_space<vmem>>, vector<1x1x16x64xf32>
    %66 = vector.shape_cast %65 : vector<1x1x16x64xf32> to vector<16x64xf32>
    %67 = vector.shape_cast %64 : vector<16x64xf32> to vector<1x1x16x64xf32>
    tpu.vector_store %arg14[%c0_65, %c5_66, %c0_67, %c0_68], %67 {strides = array<i32>} : memref<1x8x16x64xf32, #tpu.memory_space<vmem>>, vector<1x1x16x64xf32>,
    %c0_69 = arith.constant 0 : index
    %c6 = arith.constant 6 : index
    %c0_70 = arith.constant 0 : index
    %c0_71 = arith.constant 0 : index
    %68 = vector.load %arg3[%c0_69, %c6, %c0_70, %c0_71] : memref<1x8x16x128xf32, #tpu.memory_space<vmem>>, vector<1x1x16x128xf32>
    %69 = vector.shape_cast %68 : vector<1x1x16x128xf32> to vector<16x128xf32>
    %c0_72 = arith.constant 0 : index
    %c0_73 = arith.constant 0 : index
    %c0_74 = arith.constant 0 : index
    %70 = vector.load %arg10[%c0_72, %c0_73, %c0_74] : memref<1x16x128xf32, #tpu.memory_space<vmem>>, vector<1x16x128xf32>
    %71 = vector.shape_cast %70 : vector<1x16x128xf32> to vector<16x128xf32>
    %72 = arith.addf %69, %71 : vector<16x128xf32>
    %cst_75 = arith.constant dense<0.000000e+00> : vector<16x64xf32>
    %73 = tpu.matmul %72, %0, %cst_75 {dimension_numbers = #tpu.dot_dimension_numbers<[1], [0], [0], [1], [0, 0, 1, 1], [], []>} : vector<16x128xf32>, vector<128x64xf32>, vector<16x64xf32> -> vector<16x64xf32>
    %74 = vector.broadcast %1 : vector<1x64xf32> to vector<16x64xf32>
    %75 = arith.addf %73, %74 : vector<16x64xf32>
    %c0_76 = arith.constant 0 : index
    %c6_77 = arith.constant 6 : index
    %c0_78 = arith.constant 0 : index
    %c0_79 = arith.constant 0 : index
    %76 = vector.load %arg14[%c0_76, %c6_77, %c0_78, %c0_79] : memref<1x8x16x64xf32, #tpu.memory_space<vmem>>, vector<1x1x16x64xf32>
    %77 = vector.shape_cast %76 : vector<1x1x16x64xf32> to vector<16x64xf32>
    %78 = vector.shape_cast %75 : vector<16x64xf32> to vector<1x1x16x64xf32>
    tpu.vector_store %arg14[%c0_76, %c6_77, %c0_78, %c0_79], %78 {strides = array<i32>} : memref<1x8x16x64xf32, #tpu.memory_space<vmem>>, vector<1x1x16x64xf32>,
    %c0_80 = arith.constant 0 : index
    %c7 = arith.constant 7 : index
    %c0_81 = arith.constant 0 : index
    %c0_82 = arith.constant 0 : index
    %79 = vector.load %arg3[%c0_80, %c7, %c0_81, %c0_82] : memref<1x8x16x128xf32, #tpu.memory_space<vmem>>, vector<1x1x16x128xf32>
    %80 = vector.shape_cast %79 : vector<1x1x16x128xf32> to vector<16x128xf32>
    %c0_83 = arith.constant 0 : index
    %c0_84 = arith.constant 0 : index
    %c0_85 = arith.constant 0 : index
    %81 = vector.load %arg11[%c0_83, %c0_84, %c0_85] : memref<1x16x128xf32, #tpu.memory_space<vmem>>, vector<1x16x128xf32>
    %82 = vector.shape_cast %81 : vector<1x16x128xf32> to vector<16x128xf32>
    %83 = arith.addf %80, %82 : vector<16x128xf32>
    %cst_86 = arith.constant dense<0.000000e+00> : vector<16x64xf32>
    %84 = tpu.matmul %83, %0, %cst_86 {dimension_numbers = #tpu.dot_dimension_numbers<[1], [0], [0], [1], [0, 0, 1, 1], [], []>} : vector<16x128xf32>, vector<128x64xf32>, vector<16x64xf32> -> vector<16x64xf32>
    %85 = vector.broadcast %1 : vector<1x64xf32> to vector<16x64xf32>
    %86 = arith.addf %84, %85 : vector<16x64xf32>
    %c0_87 = arith.constant 0 : index
    %c7_88 = arith.constant 7 : index
    %c0_89 = arith.constant 0 : index
    %c0_90 = arith.constant 0 : index
    %87 = vector.load %arg14[%c0_87, %c7_88, %c0_89, %c0_90] : memref<1x8x16x64xf32, #tpu.memory_space<vmem>>, vector<1x1x16x64xf32>
    %88 = vector.shape_cast %87 : vector<1x1x16x64xf32> to vector<16x64xf32>
    %89 = vector.shape_cast %86 : vector<16x64xf32> to vector<1x1x16x64xf32>
    tpu.vector_store %arg14[%c0_87, %c7_88, %c0_89, %c0_90], %89 {strides = array<i32>} : memref<1x8x16x64xf32, #tpu.memory_space<vmem>>, vector<1x1x16x64xf32>,
    return
  }
  func.func @transform_0(%arg0: i32, %arg1: i32, %arg2: i32) -> (i32, i32, i32, i32) {
    %c0_i32 = arith.constant 0 : i32
    %c0_i32_0 = arith.constant 0 : i32
    return %arg0, %arg1, %arg2, %c0_i32 : i32, i32, i32, i32
  }
  func.func @transform_1(%arg0: i32, %arg1: i32, %arg2: i32) -> (i32, i32, i32) {
    %c8_i32 = arith.constant 8 : i32
    %0 = arith.muli %arg1, %c8_i32 : i32
    %c0_i32 = arith.constant 0 : i32
    %1 = arith.addi %0, %c0_i32 : i32
    %c0_i32_0 = arith.constant 0 : i32
    return %arg0, %arg2, %1 : i32, i32, i32
  }
  func.func @transform_2(%arg0: i32, %arg1: i32, %arg2: i32) -> (i32, i32, i32) {
    %c8_i32 = arith.constant 8 : i32
    %0 = arith.muli %arg1, %c8_i32 : i32
    %c1_i32 = arith.constant 1 : i32
    %1 = arith.addi %0, %c1_i32 : i32
    %c0_i32 = arith.constant 0 : i32
    return %arg0, %arg2, %1 : i32, i32, i32
  }
  func.func @transform_3(%arg0: i32, %arg1: i32, %arg2: i32) -> (i32, i32, i32) {
    %c8_i32 = arith.constant 8 : i32
    %0 = arith.muli %arg1, %c8_i32 : i32
    %c2_i32 = arith.constant 2 : i32
    %1 = arith.addi %0, %c2_i32 : i32
    %c0_i32 = arith.constant 0 : i32
    return %arg0, %arg2, %1 : i32, i32, i32
  }
  func.func @transform_4(%arg0: i32, %arg1: i32, %arg2: i32) -> (i32, i32, i32) {
    %c8_i32 = arith.constant 8 : i32
    %0 = arith.muli %arg1, %c8_i32 : i32
    %c3_i32 = arith.constant 3 : i32
    %1 = arith.addi %0, %c3_i32 : i32
    %c0_i32 = arith.constant 0 : i32
    return %arg0, %arg2, %1 : i32, i32, i32
  }
  func.func @transform_5(%arg0: i32, %arg1: i32, %arg2: i32) -> (i32, i32, i32) {
    %c8_i32 = arith.constant 8 : i32
    %0 = arith.muli %arg1, %c8_i32 : i32
    %c4_i32 = arith.constant 4 : i32
    %1 = arith.addi %0, %c4_i32 : i32
    %c0_i32 = arith.constant 0 : i32
    return %arg0, %arg2, %1 : i32, i32, i32
  }
  func.func @transform_6(%arg0: i32, %arg1: i32, %arg2: i32) -> (i32, i32, i32) {
    %c8_i32 = arith.constant 8 : i32
    %0 = arith.muli %arg1, %c8_i32 : i32
    %c5_i32 = arith.constant 5 : i32
    %1 = arith.addi %0, %c5_i32 : i32
    %c0_i32 = arith.constant 0 : i32
    return %arg0, %arg2, %1 : i32, i32, i32
  }
  func.func @transform_7(%arg0: i32, %arg1: i32, %arg2: i32) -> (i32, i32, i32) {
    %c8_i32 = arith.constant 8 : i32
    %0 = arith.muli %arg1, %c8_i32 : i32
    %c6_i32 = arith.constant 6 : i32
    %1 = arith.addi %0, %c6_i32 : i32
    %c0_i32 = arith.constant 0 : i32
    return %arg0, %arg2, %1 : i32, i32, i32
  }
  func.func @transform_8(%arg0: i32, %arg1: i32, %arg2: i32) -> (i32, i32, i32) {
    %c8_i32 = arith.constant 8 : i32
    %0 = arith.muli %arg1, %c8_i32 : i32
    %c7_i32 = arith.constant 7 : i32
    %1 = arith.addi %0, %c7_i32 : i32
    %c0_i32 = arith.constant 0 : i32
    return %arg0, %arg2, %1 : i32, i32, i32
  }
  func.func @transform_9(%arg0: i32, %arg1: i32, %arg2: i32) -> (i32, i32) {
    %c0_i32 = arith.constant 0 : i32
    %c0_i32_0 = arith.constant 0 : i32
    %c0_i32_1 = arith.constant 0 : i32
    return %c0_i32, %c0_i32_0 : i32, i32
  }
  func.func @transform_10(%arg0: i32, %arg1: i32, %arg2: i32) -> (i32, i32) {
    %c0_i32 = arith.constant 0 : i32
    %c0_i32_0 = arith.constant 0 : i32
    %c0_i32_1 = arith.constant 0 : i32
    return %c0_i32, %c0_i32_0 : i32, i32
  }
  func.func @transform_11(%arg0: i32, %arg1: i32, %arg2: i32) -> (i32, i32, i32, i32) {
    %c0_i32 = arith.constant 0 : i32
    %c0_i32_0 = arith.constant 0 : i32
    return %arg0, %arg1, %arg2, %c0_i32 : i32, i32, i32, i32
  }
}

</mosaic_0001>

<bundles_post_ra>
// kernel: tpu_custom_call.1
= control target key start
LH: loop header
LB: loop body
LE: loop exit
PB: predicated region body
PF: predicated region fallthrough
CT: control target
= control target key end

     0   :  { %s4674_s0 = inlined_call_operand.hbm [shape: f32[2,16,16,128], index: 0, kind: input, shape index: {}]   ;;  %s4675_s1 = inlined_call_operand.hbm [shape: f32[2,16,2048], index: 1, kind: input, shape index: {}]   ;;  %s4676_s2 = inlined_call_operand.hbm [shape: f32[2,16,2048], index: 2, kind: input, shape index: {}]   ;;  %s4677_s3 = inlined_call_operand.hbm [shape: f32[2,16,2048], index: 3, kind: input, shape index: {}]   ;;  %s4678_s4 = inlined_call_operand.hbm [shape: f32[2,16,2048], index: 4, kind: input, shape index: {}]   ;;  %s4679_s5 = inlined_call_operand.hbm [shape: f32[2,16,2048], index: 5, kind: input, shape index: {}]   ;;  %s4680_s6 = inlined_call_operand.hbm [shape: f32[2,16,2048], index: 6, kind: input, shape index: {}]   ;;  %s4681_s7 = inlined_call_operand.hbm [shape: f32[2,16,2048], index: 7, kind: input, shape index: {}]   ;;  %s4682_s8 = inlined_call_operand.hbm [shape: f32[2,16,2048], index: 8, kind: input, shape index: {}]   ;;  %s4683_s9 = inlined_call_operand.vmem [shape: f32[128,64], index: 9, kind: input, shape index: {}]   ;;  %s4684_s10 = inlined_call_operand.vmem [shape: f32[1,64], index: 10, kind: input, shape index: {}]   ;;  %s4685_s11 = inlined_call_operand.hbm [shape: f32[2,16,16,64], index: 11, kind: output, shape index: {}]  }
   0x1   :  { %4750 = sst [smem:[#allocation69_spill]] %s4674_s0 }
   0x2   :  { %4751 = sst [smem:[#allocation70_spill]] %s4675_s1 }
   0x3   :  { %4752 = sst [smem:[#allocation71_spill]] %s4676_s2 }
   0x4   :  { %4753 = sst [smem:[#allocation72_spill]] %s4677_s3 }
   0x5   :  { %4754 = sst [smem:[#allocation73_spill]] %s4678_s4 }
   0x6   :  { %4755 = sst [smem:[#allocation74_spill]] %s4679_s5 }
   0x7   :  { %4756 = sst [smem:[#allocation75_spill]] %s4680_s6 }
   0x8   :  { %4757 = sst [smem:[#allocation76_spill]] %s4681_s7 }
   0x9   :  { %4758 = sst [smem:[#allocation77_spill]] %s4682_s8 }
   0xa   :  { %4759 = sst [smem:[#allocation78_spill]] %s4683_s9 }
   0xb   :  { %4760 = sst [smem:[#allocation79_spill]] %s4684_s10 }
   0xc   :  { %4761 = sst [smem:[#allocation80_spill]] %s4685_s11 }
   0xd   :  { %16 = vsyncpa [#allocation3], 0 }
   0xe   :  { %18 = vsyncpa [#allocation3 + $0x1], 0 }
   0xf   :  { %19 = vsyncpa [#allocation6], 0 }
  0x10   :  { %21 = vsyncpa [#allocation6 + $0x1], 0 }
  0x11   :  { %22 = vsyncpa [#allocation9], 0 }
  0x12   :  { %24 = vsyncpa [#allocation9 + $0x1], 0 }
  0x13   :  { %25 = vsyncpa [#allocation12], 0 }
  0x14   :  { %27 = vsyncpa [#allocation12 + $0x1], 0 }
  0x15   :  { %28 = vsyncpa [#allocation15], 0 }
  0x16   :  { %30 = vsyncpa [#allocation15 + $0x1], 0 }
  0x17   :  { %31 = vsyncpa [#allocation4], 0 }
  0x18   :  { %33 = vsyncpa [#allocation4 + $0x1], 0  ;;  %s3419_s17 = smov 0   ;;  %s3421_s18 = smov 0  }
  0x19   :  { %s3423_s19 = smov 0   ;;  %s3425_s20 = smov 0  }
  0x1a   :  { %s3427_s21 = smov 0   ;;  %s3429_s22 = smov 0  }
  0x1b   :  { %s3431_s23 = smov 0   ;;  %s3433_s24 = smov 0  }
  0x1c   :  { %4762 = sst [smem:[#allocation28_spill]] %s3433_s24  ;;  %s3435_s25 = smov 0  }
  0x1d   :  { %s3437_s26 = smov 0   ;;  %s3439_s27 = smov 0  }
  0x1e   :  { %4763 = sst [smem:[#allocation29_spill]] %s3437_s26  ;;  %s3441_s28 = smov 0  }
  0x1f   :  { %s3443_s29 = smov 0   ;;  %s3445_s30 = smov 0  }
  0x20   :  { %s3447_s12 = smov 0   ;;  %s3449_s13 = smov 0  }
  0x21   :  { %s3451_s14 = smov 0   ;;  %s3453_s15 = smov 0  }
  0x22   :  { %s3455_s16 = smov 0   ;;  %s3457_s11 = smov 0  }
  0x23   :  { %4764 = sst [smem:[#allocation30_spill]] %s3455_s16  ;;  %s3459_s10 = smov 0  }
  0x24   :  { %4765 = sst [smem:[#allocation31_spill]] %s3457_s11  ;;  %s3461_s9 = smov 0  }
  0x25   :  { %4766 = sst [smem:[#allocation32_spill]] %s3459_s10  ;;  %s3463_s8 = smov 0  }
  0x26   :  { %4767 = sst [smem:[#allocation33_spill]] %s3463_s8  ;;  %s3465_s6 = smov 0  }
  0x27   :  { %s3467_s4 = smov 0   ;;  %s3469_s2 = smov 0  }
  0x28   :  { %s3471_s0 = smov 0   ;;  %s3473_s7 = smov 0  }
  0x29   :  { %4768 = sst [smem:[#allocation34_spill]] %s3471_s0  ;;  %s3475_s5 = smov 0  }
  0x2a   :  { %s3477_s3 = smov 0   ;;  %s3479_s1 = smov 0  }
  0x2b   :  { %s3481_s10 = smov 0  }
  0x2c   :  { %4769 = sst [smem:[#allocation35_spill]] %s3481_s10 }
  0x2d LB: > { %s4778_s24 = sld [smem:[#allocation28_spill]]  ;;  %s3338_s1 = sphi %s3479_s1, %s4988_s1   ;;  %s3334_s3 = sphi %s3477_s3, %s4976_s3   ;;  %s3330_s5 = sphi %s3475_s5, %s4987_s5   ;;  %s3326_s7 = sphi %s3473_s7, %s4986_s7   ;;  %s3318_s2 = sphi %s3469_s2, %s4984_s2   ;;  %s3314_s4 = sphi %s3467_s4, %s4969_s4   ;;  %s3310_s6 = sphi %s3465_s6, %s4967_s6   ;;  %s3302_s9 = sphi %s3461_s9, %s4964_s9   ;;  %s3286_s15 = sphi %s3453_s15, %s4959_s15   ;;  %s3282_s14 = sphi %s3451_s14, %s4958_s14   ;;  %s3278_s13 = sphi %s3449_s13, %s4957_s13   ;;  %s3274_s12 = sphi %s3447_s12, %s4954_s12   ;;  %s3270_s30 = sphi %s3445_s30, %s4953_s30   ;;  %s3266_s29 = sphi %s3443_s29, %s4952_s29   ;;  %s3262_s28 = sphi %s3441_s28, %s4951_s28   ;;  %s3258_s27 = sphi %s3439_s27, %s4972_s27   ;;  %s3250_s25 = sphi %s3435_s25, %s4968_s25   ;;  %s3242_s23 = sphi %s3431_s23, %s4947_s23   ;;  %s3238_s22 = sphi %s3429_s22, %s4946_s22   ;;  %s3234_s21 = sphi %s3427_s21, %s4945_s21   ;;  %s3230_s20 = sphi %s3425_s20, %s4944_s20   ;;  %s3226_s19 = sphi %s3423_s19, %s4960_s19   ;;  %s3222_s18 = sphi %s3421_s18, %s4943_s18   ;;  %s3218_s17 = sphi %s3419_s17, %s4942_s17  }
  0x2e   : > { %s4779_s26 = sld [smem:[#allocation29_spill]] }
  0x2f   : > { %4780 = sst [smem:[#allocation28_spill]] %s3218_s17 }
  0x30   : > { %4781 = sst [smem:[#allocation29_spill]] %s3222_s18  ;;  %s54_s18 = sadd.s32 1, %s3334_s3 }
  0x31   : > { %4782 = sst [smem:[#allocation36_spill]] %s3226_s19  ;;  %p56_p0 = scmp.ge.s32.totalorder %s54_s18, 2 }
  0x32   : > { %s4783_s16 = sld [smem:[#allocation30_spill]]  ;;  %s101_s19 = sadd.s32 1, %s3310_s6 }
  0x33   : > { %4784 = sst [smem:[#allocation30_spill]] %s3230_s20  ;;  %s4992_s18 = smov (%p56_p0, %s54_s18), 0 }
  0x34   : > { %s4785_s11 = sld [smem:[#allocation31_spill]] }
  0x35   : > { %4786 = sst [smem:[#allocation31_spill]] %s3234_s21 }
  0x36   : > { %s4787_s10 = sld [smem:[#allocation32_spill]] }
  0x37   : > { %4788 = sst [smem:[#allocation32_spill]] %s3238_s22 }
  0x38   : > { %4789 = sst [smem:[#allocation37_spill]] %s3242_s23 }
  0x39   : > { %s4790_s8 = sld [smem:[#allocation33_spill]] }
  0x3a   : > { %4791 = sst [smem:[#allocation33_spill]] %s4778_s24 }
  0x3b   : > { %4792 = sst [smem:[#allocation38_spill]] %s3250_s25  ;;  %s4707_s25 = sshll.u32 %s3338_s1, 5 }
  0x3c   : > { %4793 = sst [smem:[#allocation39_spill]] %s3258_s27 }
  0x3d   : > { %s4794_s0 = sld [smem:[#allocation34_spill]] }
  0x3e   : > { %4795 = sst [smem:[#allocation34_spill]] %s3262_s28 }
  0x3f   : > { %4796 = sst [smem:[#allocation40_spill]] %s3266_s29  ;;  %p108_p2 = scmp.ne.s32.totalorder %s3310_s6, %s4790_s8 }
  0x40   : > { %4797 = sst [smem:[#allocation41_spill]] %s3270_s30  ;;  %p114_p5 = scmp.ne.s32.totalorder %s4790_s8, %s3302_s9 }
  0x41   : > { %4798 = sst [smem:[#allocation42_spill]] %s3274_s12  ;;  %s4818_s12 = smov %s4992_s18 }
  0x42   : > { %s4799_s17 = sld [smem:[#allocation35_spill]] }
  0x43   : > { %4800 = sst [smem:[#allocation35_spill]] %s3282_s14 }
  0x44   : > { %4801 = sst [smem:[#allocation43_spill]] %s3286_s15 }
  0x45   : > { %4802 = sst [smem:[#allocation44_spill]] %s4783_s16 }
  0x46   : > { %4803 = sst [smem:[#allocation45_spill]] %s4785_s11  ;;  %s482_s11 = sand.u32 1, %s3310_s6  }
  0x47   : > { %4804 = sst [smem:[#allocation46_spill]] %s4787_s10 }
  0x48   : > { %4805 = sst [smem:[#allocation47_spill]] %s3302_s9  ;;  %s4816_s16 = smov %s4799_s17 }
  0x49   : > { %4806 = sst [smem:[#allocation48_spill]] %s4790_s8  ;;  %p4723_p1 = scmp.eq.s32.totalorder %s4816_s16, 0 }
  0x4a   : > { %4807 = sst [smem:[#allocation49_spill]] %s3310_s6  ;;  %p4720_p6 = scmp.lt.s32.totalorder %s4816_s16, 4 }
  0x4b   : > { %4808 = sst [smem:[#allocation50_spill]] %s3314_s4  ;;  %p3598_p4 = por %p108_p2, %p4723_p1 }
  0x4c   : > { %4809 = sst [smem:[#allocation51_spill]] %s3318_s2  ;;  %s3614_s30 = sand.u32 1, %s4816_s16  }
  0x4d   : > { %4810 = sst [smem:[#allocation52_spill]] %s4794_s0  ;;  %s1943_s9 = sshll.u32 %s482_s11, 4 }
  0x4e   : > { %4811 = sst [smem:[#allocation53_spill]] %s3326_s7  ;;  %s58_s7 = sadd.s32 1, %s3338_s1 }
  0x4f   : > { %4812 = sst [smem:[#allocation54_spill]] %s3330_s5  ;;  %s3583_s5 = sshll.u32 %s3334_s3, 3 }
  0x50   : > { %4813 = sst [smem:[#allocation55_spill]] %s3334_s3  ;;  %s4994_s7 = smov (!%p56_p0, %s58_s7), %s3338_s1 }
  0x51   : > { %4814 = sst [smem:[#allocation56_spill]] %s3338_s1  ;;  %p60_p3 = scmp.ge.s32.totalorder %s4994_s7, 2 }
  0x52   : > { %4815 = sst [smem:[#allocation57_spill]] %s4799_s17  ;;  %s3590_s17 = sshll.u32 %s4818_s12, 3 }
  0x53   : > { %4817 = sst [smem:[#allocation58_spill]] %s4992_s18  ;;  %s97_s23 = ssub.s32 %s3583_s5, %s3590_s17 }
  0x54   : > { %s4996_s7 = smov (%p60_p3, %s4994_s7), 0  ;;  %s493_s8 = sadd.s32 %s4707_s25, %s3583_s5 }
  0x55   : > { %4820 = sst [smem:[#allocation59_spill]] %s4996_s7  ;;  %s3609_s18 = ssub.s32 %s3338_s1, %s4996_s7 }
  0x56   : > { %s98_s29 = sor.u32 %s97_s23, %s3609_s18  ;;  %s3623_s4 = sshll.u32 %s493_s8, 7 }
  0x57   : > { %p99_p7 = scmp.eq.s32.totalorder %s98_s29, 0  ;;  %s484_s2 = scalar_lea.vmem [#allocation5], %s1943_s9 }
  0x58   : > { %s496_s7 = sshll.u32 %s484_s2, 4  ;;  %s4822_s12 = sld [smem:[#allocation70_spill]]  ;;  %s497_s7 = int_to_ptr.vmem [resolvable:$true] %s496_s7 }
  0x59   : > { %s3618_s10 = scalar_select %p99_p7, %s3310_s6, %s101_s19  }
  0x5a   : > { %p3633_p8 = pnand %p4720_p6, %p3598_p4  ;;  %p1975_p9 = scmp.ge.s32.totalorder %s4816_s16, 1 }
  0x5b   : > { %4821 = sst [smem:[#allocation60_spill]] %s3618_s10  ;;  %p693_p10 = scmp.lt.s32.totalorder %s4816_s16, 5 }
  0x5c   : > { %s4706_s11 = scalar_lea.sflag [#allocation6], %s3614_s30  ;;  %p2765_p11 = pneg %p3633_p8 }
  0x5d   : > { %s2776_s8 = scalar_lea.vmem %s497_s7, 256  ;;  %s3344_s2 = smov [#allocation5]  }
  0x5e   : > { %s495_s20 = scalar_lea.hbm %s4822_s12, %s3623_s4  ;;  %p2777_p12 = scmp.ne.s32.totalorder %s497_s7, %s2776_s8 }
  0x5f   : > { %s2781_s0 = sshll.u32 %s3344_s2, 4  ;;  %s2782_s0 = int_to_ptr.vmem [resolvable:$false] %s2781_s0 }
  0x60   : > { %p2779_p13 = pnand %p2777_p12, %p2765_p11  ;;  %s2783_s3 = scalar_lea.vmem %s2782_s0, 512 }
  0x61   : > { %p2784_p2 = scmp.lt.s32.totalorder %s497_s7, %s2782_s0  ;;  %p2785_p3 = scmp.lt.s32.totalorder %s2783_s3, %s2776_s8 }
  0x62   : > { %p2780_p0 = pneg %p2779_p13 }
  0x63   : > { %p2786_p4 = por %p2785_p3, %p2784_p2 }
  0x65   : > { %p2787_p7 = pnand %p2786_p4, %p2780_p0 }
  0x67   : > { %2790 = shalt.err (!%p2787_p7)
}
  0x68   : > { %s4708_s9 = smov 2048   ;;  %s4710_s19 = smov 128  }
  0x69   : > { %s4712_s24 = smov 8   ;;  %p3653_p11 = pnand %p1975_p9, %p693_p10 }
  0x6a   : > { %2474 = dma.hbm_to_vmem [thread:$0]  (!%p3633_p8), %s495_s20, 256, %s497_s7, %s4706_s11, %s4708_s9, %s4710_s19, %s4712_s24  }
  0x6b   : > { %s4824_s29 = scalar_select %p3653_p11, 1, 0 }
  0x6c   : > { %s159_s12 = sadd.s32 2, %s3583_s5  ;;  %s161_s8 = sadd.s32 2, %s3590_s17 }
  0x6d   : > { %4825 = sst [smem:[#allocation61_spill]] %s4824_s29  ;;  %s165_s2 = ssub.s32 %s159_s12, %s161_s8 }
  0x6e   : > { %s169_s0 = sadd.s32 1, %s3286_s15  ;;  %s166_s3 = sor.u32 %s165_s2, %s3609_s18 }
  0x6f   : > { %p176_p12 = scmp.ne.s32.totalorder %s3286_s15, %s3282_s14  ;;  %p167_p13 = scmp.eq.s32.totalorder %s166_s3, 0 }
  0x70   : > { %p182_p0 = scmp.ne.s32.totalorder %s3282_s14, %s3278_s13  ;;  %s535_s7 = sand.u32 1, %s3286_s15  }
  0x71   : > { %p178_p2 = por %p176_p12, %p4723_p1  ;;  %s4827_s25 = sld [smem:[#allocation72_spill]] }
  0x72   : > { %s3668_s23 = scalar_select %p167_p13, %s3286_s15, %s169_s0  }
  0x73   : > { %s1951_s19 = sshll.u32 %s535_s7, 4  ;;  %p3677_p8 = pnand %p4720_p6, %p178_p2 }
  0x74   : > { %4826 = sst [smem:[#allocation62_spill]] %s3668_s23  ;;  %s537_s8 = scalar_lea.vmem [#allocation8], %s1951_s19 }
  0x75   : > { %s550_s2 = sshll.u32 %s537_s8, 4  ;;  %s4717_s3 = scalar_lea.sflag [#allocation9], %s3614_s30  ;;  %s551_s2 = int_to_ptr.vmem [resolvable:$true] %s550_s2 }
  0x76   : > { %p2793_p9 = pneg %p3677_p8  ;;  %s2804_s0 = scalar_lea.vmem %s551_s2, 256 }
  0x77   : > { %s1681_s9 = scalar_lea.hbm %s4827_s25, %s3623_s4  ;;  %p2805_p10 = scmp.ne.s32.totalorder %s551_s2, %s2804_s0 }
  0x78   : > { %s1682_s24 = scalar_lea.hbm %s1681_s9, 256  ;;  %s3348_s11 = smov [#allocation8]  }
  0x79   : > { %p2807_p3 = pnand %p2805_p10, %p2793_p9  ;;  %s2809_s25 = sshll.u32 %s3348_s11, 4  ;;  %s2810_s25 = int_to_ptr.vmem [resolvable:$false] %s2809_s25 }
  0x7a   : > { %s2811_s9 = scalar_lea.vmem %s2810_s25, 512  ;;  %p2812_p7 = scmp.lt.s32.totalorder %s551_s2, %s2810_s25 }
  0x7b   : > { %p2808_p4 = pneg %p2807_p3  ;;  %p2813_p12 = scmp.lt.s32.totalorder %s2811_s9, %s2804_s0 }
  0x7d   : > { %p2814_p13 = por %p2813_p12, %p2812_p7 }
  0x7f   : > { %p2815_p2 = pnand %p2814_p13, %p2808_p4 }
  0x81   : > { %2818 = shalt.err (!%p2815_p2)
}
  0x82   : > { %s4829_s19 = smov 8   ;;  %s4830_s7 = smov 128  }
  0x83   : > { %s4831_s20 = smov 2048   ;;  %s227_s8 = sadd.s32 4, %s3583_s5 }
  0x84   : > { %2480 = dma.hbm_to_vmem [thread:$0]  (!%p3677_p8), %s1682_s24, 256, %s551_s2, %s4717_s3, %s4831_s20, %s4830_s7, %s4829_s19  }
  0x85   : > { %s229_s12 = sadd.s32 4, %s3590_s17  ;;  %s237_s0 = sadd.s32 1, %s3262_s28 }
  0x86   : > { %s233_s11 = ssub.s32 %s227_s8, %s229_s12  ;;  %p244_p9 = scmp.ne.s32.totalorder %s3262_s28, %s3258_s27 }
  0x87   : > { %s234_s25 = sor.u32 %s233_s11, %s3609_s18  ;;  %s589_s9 = sand.u32 1, %s3262_s28  }
  0x88   : > { %p235_p3 = scmp.eq.s32.totalorder %s234_s25, 0  ;;  %p246_p4 = por %p244_p9, %p4723_p1 }
  0x89   : > { %s1959_s6 = sshll.u32 %s589_s9, 4  ;;  %s4833_s29 = sld [smem:[#allocation74_spill]] }
  0x8a   : > { %s3703_s10 = scalar_select %p235_p3, %s3262_s28, %s237_s0  }
  0x8b   : > { %s591_s3 = scalar_lea.vmem [#allocation11], %s1959_s6  ;;  %p3711_p8 = pnand %p4720_p6, %p246_p4 }
  0x8c   : > { %4832 = sst [smem:[#allocation63_spill]] %s3703_s10  ;;  %s604_s1 = sshll.u32 %s591_s3, 4  ;;  %s605_s1 = int_to_ptr.vmem [resolvable:$true] %s604_s1 }
  0x8d   : > { %s4721_s12 = scalar_lea.sflag [#allocation12], %s3614_s30  ;;  %p2822_p7 = pneg %p3711_p8 }
  0x8e   : > { %s2833_s0 = scalar_lea.vmem %s605_s1, 256  ;;  %s3349_s11 = smov [#allocation11]  }
  0x8f   : > { %s1703_s24 = scalar_lea.hbm %s4833_s29, %s3623_s4  ;;  %p2834_p12 = scmp.ne.s32.totalorder %s605_s1, %s2833_s0 }
  0x90   : > { %s1704_s2 = scalar_lea.hbm %s1703_s24, 512  ;;  %s2838_s15 = sshll.u32 %s3349_s11, 4  ;;  %s2839_s15 = int_to_ptr.vmem [resolvable:$false] %s2838_s15 }
  0x91   : > { %p2836_p13 = pnand %p2834_p12, %p2822_p7  ;;  %s2840_s29 = scalar_lea.vmem %s2839_s15, 512 }
  0x92   : > { %p2841_p9 = scmp.lt.s32.totalorder %s605_s1, %s2839_s15  ;;  %p2842_p3 = scmp.lt.s32.totalorder %s2840_s29, %s2833_s0 }
  0x93   : > { %p2837_p2 = pneg %p2836_p13 }
  0x94   : > { %p2843_p10 = por %p2842_p3, %p2841_p9 }
  0x96   : > { %p2844_p4 = pnand %p2843_p10, %p2837_p2 }
  0x98   : > { %2847 = shalt.err (!%p2844_p4)
}
  0x99   : > { %s4835_s6 = sld [smem:[#allocation30_spill]]  ;;  %s295_s23 = sadd.s32 6, %s3583_s5 }
  0x9a   : > { %2486 = dma.hbm_to_vmem [thread:$0]  (!%p3711_p8), %s1704_s2, 256, %s605_s1, %s4721_s12, %s4831_s20, %s4830_s7, %s4829_s19  }
  0x9b   : > { %s297_s3 = sadd.s32 6, %s3590_s17  ;;  %s305_s9 = sadd.s32 1, %s3238_s22 }
  0x9c   : > { %s301_s25 = ssub.s32 %s295_s23, %s297_s3  ;;  %p312_p10 = scmp.ne.s32.totalorder %s3238_s22, %s3234_s21 }
  0x9d   : > { %s302_s24 = sor.u32 %s301_s25, %s3609_s18  ;;  %s643_s0 = sand.u32 1, %s3238_s22  }
  0x9e   : > { %p303_p7 = scmp.eq.s32.totalorder %s302_s24, 0  ;;  %p314_p13 = por %p312_p10, %p4723_p1 }
  0x9f   : > { %p318_p12 = scmp.ne.s32.totalorder %s3234_s21, %s4835_s6  ;;  %s4837_s29 = sld [smem:[#allocation76_spill]] }
  0xa0   : > { %s3736_s8 = scalar_select %p303_p7, %s3238_s22, %s305_s9  }
  0xa1   : > { %s1967_s28 = sshll.u32 %s643_s0, 4  ;;  %p3745_p8 = pnand %p4720_p6, %p314_p13 }
  0xa2   : > { %4836 = sst [smem:[#allocation30_spill]] %s3736_s8  ;;  %s645_s23 = scalar_lea.vmem [#allocation14], %s1967_s28 }
  0xa3   : > { %s658_s3 = sshll.u32 %s645_s23, 4  ;;  %s4722_s25 = scalar_lea.sflag [#allocation15], %s3614_s30  ;;  %s659_s3 = int_to_ptr.vmem [resolvable:$true] %s658_s3 }
  0xa4   : > { %p2851_p2 = pneg %p3745_p8  ;;  %s2862_s9 = scalar_lea.vmem %s659_s3, 256 }
  0xa5   : > { %s1725_s10 = scalar_lea.hbm %s4837_s29, %s3623_s4  ;;  %p2863_p9 = scmp.ne.s32.totalorder %s659_s3, %s2862_s9 }
  0xa6   : > { %s1726_s1 = scalar_lea.hbm %s1725_s10, 768  ;;  %s3350_s24 = smov [#allocation14]  }
  0xa7   : > { %p2865_p3 = pnand %p2863_p9, %p2851_p2  ;;  %s2867_s11 = sshll.u32 %s3350_s24, 4  ;;  %s2868_s11 = int_to_ptr.vmem [resolvable:$false] %s2867_s11 }
  0xa8   : > { %s2869_s10 = scalar_lea.vmem %s2868_s11, 512  ;;  %p2870_p10 = scmp.lt.s32.totalorder %s659_s3, %s2868_s11 }
  0xa9   : > { %p2866_p4 = pneg %p2865_p3  ;;  %p2871_p7 = scmp.lt.s32.totalorder %s2869_s10, %s2862_s9 }
  0xab   : > { %p2872_p13 = por %p2871_p7, %p2870_p10 }
  0xad   : > { %p2873_p6 = pnand %p2872_p13, %p2866_p4 }
  0xaf   : > { %2876 = shalt.err (!%p2873_p6)
}
  0xb0   : > { %s4839_s28 = sld [smem:[#allocation58_spill]]  ;;  %s3760_s24 = sadd.s32 4294967295, %s4816_s16  }
  0xb1   : > { %s4840_s0 = sld [smem:[#allocation55_spill]]  ;;  %s1919_s11 = sadd.s32 4294967294, %s4816_s16  }
  0xb2   : > { %s4841_s15 = sld [smem:[#allocation52_spill]]  ;;  %p4736_p9 = scmp.eq.s32.totalorder %s3760_s24, 0 }
  0xb3   : > { %s4842_s29 = sld [smem:[#allocation51_spill]]  ;;  %p4853_p13 = scmp.ne.s32.totalorder %s3258_s27, %s4779_s26 }
  0xb4   : > { %s4843_s23 = sld [smem:[#allocation50_spill]]  ;;  %p3798_p10 = por %p114_p5, %p4736_p9 }
  0xb5   : > { %2492 = dma.hbm_to_vmem [thread:$0]  (!%p3745_p8), %s1726_s1, 256, %s659_s3, %s4722_s25, %s4831_s20, %s4830_s7, %s4829_s19  }
  0xb6   : > { %s4846_s1 = sld [smem:[#allocation56_spill]]  ;;  %p3807_p7 = por %p182_p0, %p4736_p9 }
  0xb7   : > { %s63_s10 = ssub.s32 %s4840_s0, %s4839_s28  ;;  %p3825_p5 = por %p318_p12, %p4736_p9 }
  0xb8   : > { %s64_s12 = sor.u32 %s63_s10, %s3609_s18  ;;  %s69_s8 = sadd.s32 1, %s4841_s15 }
  0xb9   : > { %p67_p6 = scmp.eq.s32.totalorder %s64_s12, 0  ;;  %p76_p8 = scmp.ne.s32.totalorder %s4841_s15, %s4842_s29 }
  0xba   : > { %p4724_p2 = scmp.ne.s32.totalorder %s4842_s29, %s4843_s23  ;;  %s454_s13 = sand.u32 1, %s4841_s15  }
  0xbb   : > { %s3773_s3 = scalar_select %p67_p6, %s4841_s15, %s69_s8  }
  0xbc   : > { %p3780_p3 = por %p4723_p1, %p76_p8  ;;  %p3789_p4 = por %p4736_p9, %p4724_p2 }
  0xbd   : > { %4847 = sst [smem:[#allocation64_spill]] %s3773_s3  ;;  %p3816_p6 = por %p4853_p13, %p4736_p9 }
  0xbe   : > { %s4851_s8 = scalar_select %p3807_p7, 1, 0 }
  0xbf   : > { %s4854_s10 = scalar_select %p3816_p6, 1, 0 }
  0xc0   : > { %4852 = sst [smem:[#allocation47_spill]] %s4851_s8  ;;  %p422_p1 = scmp.eq.s32.totalorder %s3760_s24, 3 }
  0xc1   : > { %4855 = sst [smem:[#allocation65_spill]] %s4854_s10  ;;  %p428_p2 = scmp.eq.s32.totalorder %s1919_s11, 3 }
  0xc2   : > { %s4856_s2 = scalar_select %p3825_p5, 1, 0 }
  0xc3   : > { %s2022_s9 = sshll.u32 %s4840_s0, 4  ;;  %p3835_p0 = por %p422_p1, %p76_p8 }
  0xc4   : > { %4857 = sst [smem:[#allocation66_spill]] %s4856_s2  ;;  %p4859_p7 = scmp.ne.s32.totalorder %s4842_s29, %s4843_s23 }
  0xc5   : > { %s4858_s3 = scalar_select %p3835_p0, 1, 0 }
  0xc6   : > { %p3842_p13 = por %p428_p2, %p4859_p7  ;;  %s1938_s22 = sshll.u32 %s454_s13, 7 }
  0xc7   : > { %s4861_s6 = sshll.u32 %s4846_s1, 5  ;;  %s458_s27 = scalar_lea.vmem [#allocation2], %s1938_s22 }
  0xc8   : > { %s4860_s26 = scalar_select %p3842_p13, 1, 0 }
  0xc9   : > { %s467_s21 = sadd.s32 %s2022_s9, %s4861_s6  ;;  %s470_s2 = sshll.u32 %s458_s27, 4  ;;  %s471_s2 = int_to_ptr.vmem [resolvable:$true] %s470_s2 }
  0xca   : > { %s1942_s10 = sshll.u32 %s467_s21, 7  ;;  %s4862_s14 = sld [smem:[#allocation69_spill]] }
  0xcb   : > { %p4863_p1 = scmp.lt.s32.totalorder %s4816_s16, 4  ;;  %s455_s29 = scalar_lea.sflag [#allocation3], %s454_s13 }
  0xcc   : > { %s2891_s23 = scalar_lea.vmem %s471_s2, 2048  ;;  %s3351_s21 = smov [#allocation2]  }
  0xcd   : > { %p3855_p12 = pnand %p4863_p1, %p3780_p3  ;;  %p2892_p2 = scmp.ne.s32.totalorder %s471_s2, %s2891_s23 }
  0xce   : > { %s2896_s22 = sshll.u32 %s3351_s21, 4  ;;  %s2897_s22 = int_to_ptr.vmem [resolvable:$false] %s2896_s22 }
  0xcf   : > { %p2880_p8 = pneg %p3855_p12  ;;  %s2898_s27 = scalar_lea.vmem %s2897_s22, 4096 }
  0xd0   : > { %s469_s0 = scalar_lea.hbm %s4862_s14, %s1942_s10  ;;  %p2899_p13 = scmp.lt.s32.totalorder %s471_s2, %s2897_s22 }
  0xd1   : > { %p2894_p7 = pnand %p2892_p2, %p2880_p8  ;;  %p2900_p0 = scmp.lt.s32.totalorder %s2898_s27, %s2891_s23 }
  0xd3   : > { %p2895_p9 = pneg %p2894_p7  ;;  %p2901_p5 = por %p2900_p0, %p2899_p13 }
  0xd5   : > { %p2902_p6 = pnand %p2901_p5, %p2895_p9 }
  0xd7   : > { %2905 = shalt.err (!%p2902_p6)
}
  0xd8   : > { %s4865_s14 = sld [smem:[#allocation46_spill]]  ;;  %s125_s8 = sadd.s32 1, %s3583_s5 }
  0xd9   : > { %s4866_s25 = sld [smem:[#allocation45_spill]]  ;;  %s127_s10 = sadd.s32 1, %s3590_s17 }
  0xda   : > { %s4867_s1 = sld [smem:[#allocation44_spill]]  ;;  %s131_s13 = ssub.s32 %s125_s8, %s127_s10 }
  0xdb   : > { %2471 = dma.hbm_to_vmem [thread:$0]  (!%p3855_p12), %s469_s0, 2048, %s471_s2, %s455_s29, %s4830_s7, %s4830_s7, %s4829_s19  }
  0xdc   : > { %s132_s6 = sor.u32 %s131_s13, %s3609_s18  ;;  %p4868_p5 = scmp.eq.s32.totalorder %s4816_s16, 0 }
  0xdd   : > { %p133_p3 = scmp.eq.s32.totalorder %s132_s6, 0  ;;  %p4870_p13 = scmp.eq.s32.totalorder %s3760_s24, 0 }
  0xde   : > { %s135_s9 = sadd.s32 1, %s4865_s14  ;;  %s508_s11 = sand.u32 1, %s4865_s14  }
  0xdf   : > { %p142_p9 = scmp.ne.s32.totalorder %s4865_s14, %s4866_s25  ;;  %s4998_s14 = smov (!%p133_p3, %s4865_s14), %s135_s9 }
  0xe0   : > { %p148_p6 = scmp.ne.s32.totalorder %s4866_s25, %s4867_s1  ;;  %4869 = sst [smem:[#allocation67_spill]] %s4998_s14 }
  0xe1   : > { %p144_p0 = por %p142_p9, %p4868_p5  ;;  %s1947_s2 = sshll.u32 %s508_s11, 4 }
  0xe2   : > { %p3882_p1 = por %p148_p6, %p4870_p13  ;;  %s4872_s23 = sld [smem:[#allocation71_spill]] }
  0xe3   : > { %s510_s27 = scalar_lea.vmem [#allocation7], %s1947_s2  ;;  %p4873_p12 = scmp.lt.s32.totalorder %s4816_s16, 4 }
  0xe4   : > { %s4871_s15 = scalar_select %p3882_p1, 1, 0 }
  0xe5   : > { %s523_s8 = sshll.u32 %s510_s27, 4  ;;  %p3892_p8 = pnand %p4873_p12, %p144_p0  ;;  %s524_s8 = int_to_ptr.vmem [resolvable:$true] %s523_s8 }
  0xe6   : > { %s2919_s1 = scalar_lea.vmem %s524_s8, 256  ;;  %s3352_s10 = smov [#allocation7]  }
  0xe7   : > { %p2908_p2 = pneg %p3892_p8  ;;  %p2920_p7 = scmp.ne.s32.totalorder %s524_s8, %s2919_s1 }
  0xe8   : > { %s1670_s21 = scalar_lea.hbm %s4872_s23, %s3623_s4  ;;  %s2924_s13 = sshll.u32 %s3352_s10, 4  ;;  %s2925_s13 = int_to_ptr.vmem [resolvable:$false] %s2924_s13 }
  0xe9   : > { %s1671_s22 = scalar_lea.hbm %s1670_s21, 128  ;;  %p2922_p9 = pnand %p2920_p7, %p2908_p2 }
  0xea   : > { %s2926_s9 = scalar_lea.vmem %s2925_s13, 512  ;;  %p2927_p6 = scmp.lt.s32.totalorder %s524_s8, %s2925_s13 }
  0xeb   : > { %p2923_p3 = pneg %p2922_p9  ;;  %p2928_p5 = scmp.lt.s32.totalorder %s2926_s9, %s2919_s1 }
  0xed   : > { %p2929_p13 = por %p2928_p5, %p2927_p6 }
  0xef   : > { %p2930_p1 = pnand %p2929_p13, %p2923_p3 }
  0xf1   : > { %2933 = shalt.err (!%p2930_p1)
}
  0xf2   : > { %s4875_s6 = scalar_lea.sflag [#allocation6], %s3614_s30  ;;  %s4876_s11 = sld [smem:[#allocation42_spill]] }
  0xf3   : > { %s4877_s2 = sld [smem:[#allocation41_spill]]  ;;  %s193_s29 = sadd.s32 3, %s3583_s5 }
  0xf4   : > { %s4878_s0 = sld [smem:[#allocation40_spill]]  ;;  %s195_s23 = sadd.s32 3, %s3590_s17 }
  0xf5   : > { %2477 = dma.hbm_to_vmem [thread:$0]  (!%p3892_p8), %s1671_s22, 256, %s524_s8, %s4875_s6, %s4831_s20, %s4830_s7, %s4829_s19  }
  0xf6   : > { %s199_s27 = ssub.s32 %s193_s29, %s195_s23  ;;  %p4879_p2 = scmp.eq.s32.totalorder %s4816_s16, 0 }
  0xf7   : > { %s200_s25 = sor.u32 %s199_s27, %s3609_s18  ;;  %p4880_p9 = scmp.eq.s32.totalorder %s3760_s24, 0 }
  0xf8   : > { %s203_s21 = sadd.s32 1, %s4876_s11  ;;  %p201_p12 = scmp.eq.s32.totalorder %s200_s25, 0 }
  0xf9   : > { %p210_p0 = scmp.ne.s32.totalorder %s4876_s11, %s4877_s2  ;;  %s562_s10 = sand.u32 1, %s4876_s11  }
  0xfa   : > { %p216_p1 = scmp.ne.s32.totalorder %s4877_s2, %s4878_s0  ;;  %s5000_s11 = smov (!%p201_p12, %s4876_s11), %s203_s21 }
  0xfb   : > { %p212_p7 = por %p210_p0, %p4879_p2  ;;  %4882 = sst [smem:[#allocation68_spill]] %s5000_s11 }
  0xfc   : > { %p3917_p3 = por %p216_p1, %p4880_p9  ;;  %s1955_s22 = sshll.u32 %s562_s10, 4 }
  0xfd   : > { %s4883_s9 = sld [smem:[#allocation73_spill]]  ;;  %s564_s23 = scalar_lea.vmem [#allocation10], %s1955_s22 }
  0xfe   : > { %s4881_s1 = scalar_select %p3917_p3, 1, 0 }
  0xff   : > { %s577_s27 = sshll.u32 %s564_s23, 4  ;;  %p4884_p8 = scmp.lt.s32.totalorder %s4816_s16, 4  ;;  %s578_s27 = int_to_ptr.vmem [resolvable:$true] %s577_s27 }
 0x100   : > { %s2948_s0 = scalar_lea.vmem %s578_s27, 256  ;;  %s3353_s21 = smov [#allocation10]  }
 0x101   : > { %p3931_p6 = pnand %p4884_p8, %p212_p7  ;;  %p2949_p13 = scmp.ne.s32.totalorder %s578_s27, %s2948_s0 }
 0x102   : > { %s2953_s25 = sshll.u32 %s3353_s21, 4  ;;  %s2954_s25 = int_to_ptr.vmem [resolvable:$false] %s2953_s25 }
 0x103   : > { %s1692_s6 = scalar_lea.hbm %s4883_s9, %s3623_s4  ;;  %p2937_p5 = pneg %p3931_p6 }
 0x104   : > { %s1693_s29 = scalar_lea.hbm %s1692_s6, 384  ;;  %s2955_s10 = scalar_lea.vmem %s2954_s25, 512 }
 0x105   : > { %p2951_p0 = pnand %p2949_p13, %p2937_p5  ;;  %p2956_p12 = scmp.lt.s32.totalorder %s578_s27, %s2954_s25 }
 0x106   : > { %p2957_p2 = scmp.lt.s32.totalorder %s2955_s10, %s2948_s0 }
 0x107   : > { %p2952_p1 = pneg %p2951_p0 }
 0x108   : > { %p2958_p9 = por %p2957_p2, %p2956_p12 }
 0x10a   : > { %p2959_p3 = pnand %p2958_p9, %p2952_p1 }
 0x10c   : > { %2962 = shalt.err (!%p2959_p3)
}
 0x10d   : > { %s4886_s22 = scalar_lea.sflag [#allocation9], %s3614_s30  ;;  %s4887_s8 = sld [smem:[#allocation38_spill]] }
 0x10e   : > { %s4888_s13 = sld [smem:[#allocation33_spill]]  ;;  %s261_s6 = sadd.s32 5, %s3583_s5 }
 0x10f   : > { %s4889_s9 = sld [smem:[#allocation37_spill]]  ;;  %s263_s23 = sadd.s32 5, %s3590_s17 }
 0x110   : > { %2483 = dma.hbm_to_vmem [thread:$0]  (!%p3931_p6), %s1693_s29, 256, %s578_s27, %s4886_s22, %s4831_s20, %s4830_s7, %s4829_s19  }
 0x111   : > { %s267_s2 = ssub.s32 %s261_s6, %s263_s23  ;;  %p4890_p5 = scmp.eq.s32.totalorder %s4816_s16, 0 }
 0x112   : > { %s268_s21 = sor.u32 %s267_s2, %s3609_s18  ;;  %p4891_p0 = scmp.eq.s32.totalorder %s3760_s24, 0 }
 0x113   : > { %s271_s0 = sadd.s32 1, %s4887_s8  ;;  %p269_p3 = scmp.eq.s32.totalorder %s268_s21, 0 }
 0x114   : > { %p278_p7 = scmp.ne.s32.totalorder %s4887_s8, %s4888_s13  ;;  %s616_s25 = sand.u32 1, %s4887_s8  }
 0x115   : > { %p284_p8 = scmp.ne.s32.totalorder %s4888_s13, %s4889_s9  ;;  %s5002_s8 = smov (!%p269_p3, %s4887_s8), %s271_s0 }
 0x116   : > { %p280_p13 = por %p278_p7, %p4890_p5  ;;  %s1963_s29 = sshll.u32 %s616_s25, 4 }
 0x117   : > { %p3960_p1 = por %p284_p8, %p4891_p0  ;;  %s4893_s6 = sld [smem:[#allocation75_spill]] }
 0x118   : > { %s618_s2 = scalar_lea.vmem [#allocation13], %s1963_s29  ;;  %p4894_p6 = scmp.lt.s32.totalorder %s4816_s16, 4 }
 0x119   : > { %s4892_s10 = scalar_select %p3960_p1, 1, 0 }
 0x11a   : > { %s631_s11 = sshll.u32 %s618_s2, 4  ;;  %p3970_p12 = pnand %p4894_p6, %p280_p13  ;;  %s632_s11 = int_to_ptr.vmem [resolvable:$true] %s631_s11 }
 0x11b   : > { %s2977_s9 = scalar_lea.vmem %s632_s11, 256  ;;  %s3354_s0 = smov [#allocation13]  }
 0x11c   : > { %p2966_p2 = pneg %p3970_p12  ;;  %p2978_p9 = scmp.ne.s32.totalorder %s632_s11, %s2977_s9 }
 0x11d   : > { %s1714_s23 = scalar_lea.hbm %s4893_s6, %s3623_s4  ;;  %s2982_s21 = sshll.u32 %s3354_s0, 4  ;;  %s2983_s21 = int_to_ptr.vmem [resolvable:$false] %s2982_s21 }
 0x11e   : > { %s1715_s14 = scalar_lea.hbm %s1714_s23, 640  ;;  %p2980_p7 = pnand %p2978_p9, %p2966_p2 }
 0x11f   : > { %s2984_s25 = scalar_lea.vmem %s2983_s21, 512  ;;  %p2985_p8 = scmp.lt.s32.totalorder %s632_s11, %s2983_s21 }
 0x120   : > { %p2981_p3 = pneg %p2980_p7  ;;  %p2986_p5 = scmp.lt.s32.totalorder %s2984_s25, %s2977_s9 }
 0x122   : > { %p2987_p0 = por %p2986_p5, %p2985_p8 }
 0x124   : > { %p2988_p1 = pnand %p2987_p0, %p2981_p3 }
 0x126   : > { %2991 = shalt.err (!%p2988_p1)
}
 0x127   : > { %s4896_s29 = scalar_lea.sflag [#allocation12], %s3614_s30  ;;  %s4897_s27 = sld [smem:[#allocation36_spill]] }
 0x128   : > { %s4898_s22 = sld [smem:[#allocation29_spill]]  ;;  %s329_s23 = sadd.s32 7, %s3583_s5 }
 0x129   : > { %s4899_s6 = sld [smem:[#allocation28_spill]]  ;;  %s331_s2 = sadd.s32 7, %s3590_s17 }
 0x12a   : > { %2489 = dma.hbm_to_vmem [thread:$0]  (!%p3970_p12), %s1715_s14, 256, %s632_s11, %s4896_s29, %s4831_s20, %s4830_s7, %s4829_s19  }
 0x12b   : > { %s335_s9 = ssub.s32 %s329_s23, %s331_s2  ;;  %p4900_p2 = scmp.eq.s32.totalorder %s4816_s16, 0 }
 0x12c   : > { %s336_s0 = sor.u32 %s335_s9, %s3609_s18  ;;  %p4901_p7 = scmp.eq.s32.totalorder %s3760_s24, 0 }
 0x12d   : > { %s339_s13 = sadd.s32 1, %s4897_s27  ;;  %p337_p6 = scmp.eq.s32.totalorder %s336_s0, 0 }
 0x12e   : > { %p346_p13 = scmp.ne.s32.totalorder %s4897_s27, %s4898_s22  ;;  %s670_s25 = sand.u32 1, %s4897_s27  }
 0x12f   : > { %p352_p1 = scmp.ne.s32.totalorder %s4898_s22, %s4899_s6  ;;  %s5004_s27 = smov (!%p337_p6, %s4897_s27), %s339_s13 }
 0x130   : > { %p348_p9 = por %p346_p13, %p4900_p2  ;;  %s1971_s14 = sshll.u32 %s670_s25, 4 }
 0x131   : > { %p3995_p3 = por %p352_p1, %p4901_p7  ;;  %s4903_s11 = sld [smem:[#allocation77_spill]] }
 0x132   : > { %s672_s2 = scalar_lea.vmem [#allocation16], %s1971_s14  ;;  %p4904_p12 = scmp.lt.s32.totalorder %s4816_s16, 4 }
 0x133   : > { %s4902_s21 = scalar_select %p3995_p3, 1, 0 }
 0x134   : > { %s685_s18 = sshll.u32 %s672_s2, 4  ;;  %p4009_p8 = pnand %p4904_p12, %p348_p9  ;;  %s686_s18 = int_to_ptr.vmem [resolvable:$true] %s685_s18 }
 0x135   : > { %s3006_s6 = scalar_lea.vmem %s686_s18, 256  ;;  %s3355_s13 = smov [#allocation16]  }
 0x136   : > { %p2995_p5 = pneg %p4009_p8  ;;  %p3007_p0 = scmp.ne.s32.totalorder %s686_s18, %s3006_s6 }
 0x137   : > { %s1736_s29 = scalar_lea.hbm %s4903_s11, %s3623_s4  ;;  %s3011_s9 = sshll.u32 %s3355_s13, 4  ;;  %s3012_s9 = int_to_ptr.vmem [resolvable:$false] %s3011_s9 }
 0x138   : > { %s1737_s23 = scalar_lea.hbm %s1736_s29, 896  ;;  %p3009_p13 = pnand %p3007_p0, %p2995_p5 }
 0x139   : > { %s3013_s4 = scalar_lea.vmem %s3012_s9, 512  ;;  %p3014_p6 = scmp.lt.s32.totalorder %s686_s18, %s3012_s9 }
 0x13a   : > { %p3010_p1 = pneg %p3009_p13  ;;  %p3015_p2 = scmp.lt.s32.totalorder %s3013_s4, %s3006_s6 }
 0x13c   : > { %p3016_p7 = por %p3015_p2, %p3014_p6 }
 0x13e   : > { %p3017_p3 = pnand %p3016_p7, %p3010_p1 }
 0x140   : > { %3020 = shalt.err (!%p3017_p3)
}
 0x141   : > { %s4906_s0 = scalar_lea.sflag [#allocation15], %s3614_s30  ;;  %697 = sbr.rel (%p3653_p11) target bundleno = 764 (0x2fc), region = 64 }
 0x142   : > { %2495 = dma.hbm_to_vmem [thread:$0]  (!%p4009_p8), %s1737_s23, 256, %s686_s18, %s4906_s0, %s4831_s20, %s4830_s7, %s4829_s19  }
 0x143   : > { %s4908_s14 = sld [smem:[#allocation51_spill]] (!%p3653_p11) }
 0x149   : > { %s4025_s5 = sand.u32 1, %s4908_s14  }
 0x14a   : > { %s4744_s17 = sshll.u32 %s4025_s5, 7  ;;  %s700_s11 = scalar_lea.sflag [#allocation3], %s4025_s5 }
 0x14b   : > { %s4031_s29 = scalar_lea.vmem [#allocation2], %s4744_s17 }
 0x14c   : > { %3177 = dma.done.wait (%p3789_p4), %s700_s11, 2048  }
 0x14d   : > { %3179 = vsyncadd (%p3789_p4), %s700_s11, 4294965248  ;;  %s4909_s30 = sld [smem:[#allocation48_spill]]  ;;  %s4038_s19 = sand.u32 1, %s3760_s24  }
 0x14e   : > { %s709_s23 = scalar_lea.sflag [#allocation6], %s4038_s19 }
 0x153   : > { %s710_s7 = sand.u32 1, %s4909_s30  }
 0x154   : > { %s4041_s20 = sshll.u32 %s710_s7, 4 }
 0x155   : > { %s712_s2 = scalar_lea.vmem [#allocation5], %s4041_s20 }
 0x156   : > { %3181 = dma.done.wait (%p3798_p10), %s709_s23, 256  }
 0x157   : > { %3183 = vsyncadd (%p3798_p10), %s709_s23, 4294967040  ;;  %s4910_s18 = sld [smem:[#allocation45_spill]]  ;;  %p4911_p11 = scmp.ne.s32.totalorder %s4871_s15, 0 }
 0x15d   : > { %s719_s12 = sand.u32 1, %s4910_s18  }
 0x15e   : > { %s4050_s22 = sshll.u32 %s719_s12, 4 }
 0x15f   : > { %s721_s24 = scalar_lea.vmem [#allocation7], %s4050_s22 }
 0x160   : > { %3185 = dma.done.wait (%p4911_p11), %s709_s23, 256  }
 0x161   : > { %3187 = vsyncadd (%p4911_p11), %s709_s23, 4294967040  ;;  %s4912_s6 = sld [smem:[#allocation35_spill]]  ;;  %s727_s28 = scalar_lea.sflag [#allocation9], %s4038_s19 }
 0x162   : > { %s4913_s13 = sld [smem:[#allocation47_spill]] }
 0x167   : > { %s728_s9 = sand.u32 1, %s4912_s6  }
 0x168   : > { %s4058_s4 = sshll.u32 %s728_s9, 4  ;;  %p4914_p4 = scmp.ne.s32.totalorder %s4913_s13, 0 }
 0x16a   : > { %3189 = dma.done.wait (%p4914_p4), %s727_s28, 256  }
 0x16b   : > { %3191 = vsyncadd (%p4914_p4), %s727_s28, 4294967040  ;;  %s4915_s25 = sld [smem:[#allocation41_spill]]  ;;  %p4916_p10 = scmp.ne.s32.totalorder %s4881_s1, 0 }
 0x171   : > { %s737_s14 = sand.u32 1, %s4915_s25  }
 0x172   : > { %s4067_s11 = sshll.u32 %s737_s14, 4 }
 0x173   : > { %s739_s15 = scalar_lea.vmem [#allocation10], %s4067_s11 }
 0x174   : > { %3193 = dma.done.wait (%p4916_p10), %s727_s28, 256  }
 0x175   : > { %3195 = vsyncadd (%p4916_p10), %s727_s28, 4294967040  ;;  %s4917_s30 = sld [smem:[#allocation39_spill]]  ;;  %s745_s12 = scalar_lea.sflag [#allocation12], %s4038_s19 }
 0x176   : > { %s4918_s7 = sld [smem:[#allocation65_spill]] }
 0x17b   : > { %s746_s23 = sand.u32 1, %s4917_s30  }
 0x17c   : > { %s4075_s18 = sshll.u32 %s746_s23, 4  ;;  %p4919_p9 = scmp.ne.s32.totalorder %s4918_s7, 0 }
 0x17d   : > { %s748_s6 = scalar_lea.vmem [#allocation11], %s4075_s18 }
 0x17e   : > { %3197 = dma.done.wait (%p4919_p9), %s745_s12, 256  }
 0x17f   : > { %3199 = vsyncadd (%p4919_p9), %s745_s12, 4294967040  ;;  %s4920_s13 = sld [smem:[#allocation33_spill]]  ;;  %p4921_p3 = scmp.ne.s32.totalorder %s4892_s10, 0 }
 0x185   : > { %s755_s9 = sand.u32 1, %s4920_s13  }
 0x186   : > { %s4084_s25 = sshll.u32 %s755_s9, 4 }
 0x187   : > { %3201 = dma.done.wait (%p4921_p3), %s745_s12, 256  }
 0x188   : > { %3203 = vsyncadd (%p4921_p3), %s745_s12, 4294967040  ;;  %s4922_s28 = sld [smem:[#allocation31_spill]]  ;;  %s763_s7 = scalar_lea.sflag [#allocation15], %s4038_s19 }
 0x189   : > { %s4923_s14 = sld [smem:[#allocation66_spill]] }
 0x18e   : > { %s764_s30 = sand.u32 1, %s4922_s28  }
 0x18f   : > { %s4092_s23 = sshll.u32 %s764_s30, 4  ;;  %p4924_p12 = scmp.ne.s32.totalorder %s4923_s14, 0 }
 0x190   : > { %s766_s17 = scalar_lea.vmem [#allocation14], %s4092_s23 }
 0x191   : > { %3205 = dma.done.wait (%p4924_p12), %s763_s7, 256  }
 0x192   : > { %3207 = vsyncadd (%p4924_p12), %s763_s7, 4294967040  ;;  %s4925_s13 = sld [smem:[#allocation29_spill]]  ;;  %p4926_p8 = scmp.ne.s32.totalorder %s4902_s21, 0 }
 0x198   : > { %s773_s9 = sand.u32 1, %s4925_s13  }
 0x199   : > { %s4101_s1 = sshll.u32 %s773_s9, 4 }
 0x19a   : > { %s775_s10 = scalar_lea.vmem [#allocation16], %s4101_s1 }
 0x19b   : > { %3209 = dma.done.wait (%p4926_p8), %s763_s7, 256  }
 0x19c   : > { %3211 = vsyncadd (%p4926_p8), %s763_s7, 4294967040  ;;  %s4927_s28 = sld [smem:[#allocation78_spill]]  ;;  %v898_v15 = vld [vmem:[%s4031_s29] sm:$0xff]  ;;  %v1987_v17 = vld [vmem:[%s4031_s29 + $0x10] sm:$0xff]  ;;  %s4929_s20 = scalar_lea.vmem [#allocation8], %s4058_s4  ;;  %vm985_vm0 = vcmask 523264  }
 0x19d   : > { %v900_v16 = vld [vmem:[%s712_s2] sm:$0xff]  ;;  %v899_v19 = vld [vmem:[%s4031_s29 + $0x8] sm:$0xff]  ;;  %v1988_v21 = vld [vmem:[%s4031_s29 + $0x18] sm:$0xff]  ;;  %s4931_s22 = scalar_lea.vmem [#allocation13], %s4084_s25  ;;  %s4933_s4 = sld [smem:[#allocation79_spill]] }
 0x19e   : > { %v991_v18 = vld [vmem:[%s721_s24] sm:$0xff]  ;;  %v901_v20 = vld [vmem:[%s712_s2 + $0x8] sm:$0xff]  ;;  %v902_v24 = vadd.f32 %v900_v16, %v898_v15  ;;  %s4930_s2 = smov %s4929_s20  ;;  %s4934_s11 = sshll.u32 %s4025_s5, 7 }
 0x19f   : > { %v992_v22 = vld [vmem:[%s721_s24 + $0x8] sm:$0xff]  ;;  %v993_v25 = vadd.f32 %v1987_v17, %v991_v18  ;;  %v903_v26 = vadd.f32 %v901_v20, %v899_v19  ;;  %v1991_v28 = vld [vmem:[%s4031_s29 + $0x20] sm:$0xff]  ;;  %v1995_v30 = vld [vmem:[%s4031_s29 + $0x30] sm:$0xff]  ;;  %s4932_s24 = smov %s4931_s22  ;;  %s4935_s18 = sld [smem:[#allocation53_spill]] }
 0x1a0   : > { %v994_v27 = vadd.f32 %v1988_v21, %v992_v22  ;;  %2200 = vmatprep.mubr.f32.mxu0 %v902_v24  ;;  %v1076_v29 = vld [vmem:[%s4929_s20] sm:$0xff]  ;;  %v1992_v32 = vld [vmem:[%s4031_s29 + $0x28] sm:$0xff]  ;;  %v1996_v34 = vld [vmem:[%s4031_s29 + $0x38] sm:$0xff]  ;;  %s4937_s12 = sld [smem:[#allocation80_spill]]  ;;  %p4939_p0 = scmp.ne.s32.totalorder %s4858_s3, 0 }
 0x1a1   : > { %2235 = vmatprep.mubr.f32.mxu1 %v993_v25  ;;  %v1161_v31 = vld [vmem:[%s739_s15] sm:$0xff]  ;;  %v1077_v33 = vld [vmem:[%s4930_s2 + $0x8] sm:$0xff]  ;;  %v1078_v36 = vadd.f32 %v1991_v28, %v1076_v29  ;;  %v2004_v46 = vld [vmem:[%s4031_s29 + $0x58] sm:$0xff]  ;;  %s3356_s14 = smov [#allocation17]  }
 0x1a2   : > { %s4928_s0 = smov %s4927_s28  ;;  %v4111_v0 = vld [vmem:[%s4927_s28 + $0x78] sm:$0xff]  ;;  %v1163_v37 = vadd.f32 %v1995_v30, %v1161_v31  ;;  %v1079_v38 = vadd.f32 %v1992_v32, %v1077_v33  ;;  %v1999_v40 = vld [vmem:[%s4031_s29 + $0x40] sm:$0xff]  ;;  %v2003_v42 = vld [vmem:[%s4031_s29 + $0x50] sm:$0xff]  ;;  %s1584_s28 = scalar_lea.sflag [#allocation4], %s4025_s5 }
 0x1a3   : > { %v4116_v1 = vld [vmem:[%s4928_s0 + $0x70] sm:$0xff]  ;;  %2168 = vmatprep.subr.mxu0 %v4111_v0  ;;  %2203 = vmatprep.subr.mxu1 %v4111_v0  ;;  %v4125_v2 = vld [vmem:[%s4928_s0 + $0x68] sm:$0xff]  ;;  %v4134_v3 = vld [vmem:[%s4928_s0 + $0x60] sm:$0xff]  ;;  %s3026_s21 = sshll.u32 %s3356_s14, 4  ;;  %s3027_s21 = int_to_ptr.vmem [resolvable:$false] %s3026_s21 }
 0x1a4   : > { %2169 = vmatpush3.msra.mxu0 %v4111_v0  ;;  %2204 = vmatpush3.msra.mxu1 %v4111_v0  ;;  %v4143_v4 = vld [vmem:[%s4928_s0 + $0x58] sm:$0xff]  ;;  %v4152_v5 = vld [vmem:[%s4928_s0 + $0x50] sm:$0xff]  ;;  %v4161_v6 = vld [vmem:[%s4928_s0 + $0x48] sm:$0xff]  ;;  %s3028_s20 = scalar_lea.vmem %s3027_s21, 4096 }
 0x1a5   : > { %2170 = vmatprep.subr.mxu0 %v4116_v1  ;;  %2205 = vmatprep.subr.mxu1 %v4116_v1  ;;  %v4170_v7 = vld [vmem:[%s4928_s0 + $0x40] sm:$0xff]  ;;  %v4179_v8 = vld [vmem:[%s4928_s0 + $0x38] sm:$0xff]  ;;  %v4188_v9 = vld [vmem:[%s4928_s0 + $0x30] sm:$0xff]  ;;  %s2023_s25 = sshll.u32 %s4935_s18, 4 }
 0x1a6   : > { %2171 = vmatpush3.msra.mxu0 %v4116_v1  ;;  %2206 = vmatpush3.msra.mxu1 %v4116_v1  ;;  %v4197_v10 = vld [vmem:[%s4928_s0 + $0x28] sm:$0xff]  ;;  %v4206_v11 = vld [vmem:[%s4928_s0 + $0x20] sm:$0xff]  ;;  %v4215_v12 = vld [vmem:[%s4928_s0 + $0x18] sm:$0xff] }
 0x1a7   : > { %2172 = vmatprep.subr.mxu0 %v4125_v2  ;;  %2207 = vmatprep.subr.mxu1 %v4125_v2  ;;  %v4224_v13 = vld [vmem:[%s4928_s0 + $0x10] sm:$0xff]  ;;  %v4231_v14 = vld [vmem:[%s4928_s0 + $0x8] sm:$0xff]  ;;  %v4254_v23 = vld [vmem:[%s4928_s0] sm:$0xff]  ;;  %s4938_s0 = smov %s4937_s12 }
 0x1a8   : > { %2173 = vmatpush3.msra.mxu0 %v4125_v2  ;;  %2208 = vmatpush3.msra.mxu1 %v4125_v2  ;;  %v1162_v35 = vld [vmem:[%s739_s15 + $0x8] sm:$0xff]  ;;  %v1246_v41 = vld [vmem:[%s748_s6] sm:$0xff]  ;;  %s4497_s15 = scalar_lea.vmem [#allocation17], %s4934_s11 }
 0x1a9   : > { %2174 = vmatprep.subr.mxu0 %v4134_v3  ;;  %2209 = vmatprep.subr.mxu1 %v4134_v3  ;;  %v1164_v39 = vadd.f32 %v1996_v34, %v1162_v35  ;;  %v1331_v43 = vld [vmem:[%s4931_s22] sm:$0xff]  ;;  %v2000_v44 = vld [vmem:[%s4031_s29 + $0x48] sm:$0xff]  ;;  %v1248_v48 = vadd.f32 %v1999_v40, %v1246_v41  ;;  %v2012_v58 = vld [vmem:[%s4031_s29 + $0x78] sm:$0xff]  ;;  %s1602_s7 = sshll.u32 %s4497_s15, 4  ;;  %s4531_s7 = int_to_ptr.vmem [resolvable:$true] %s1602_s7 }
 0x1aa   : > { %2175 = vmatpush3.msra.mxu0 %v4134_v3  ;;  %2210 = vmatpush3.msra.mxu1 %v4134_v3  ;;  %v1247_v45 = vld [vmem:[%s748_s6 + $0x8] sm:$0xff]  ;;  %v1333_v49 = vadd.f32 %v2003_v42, %v1331_v43  ;;  %v2007_v52 = vld [vmem:[%s4031_s29 + $0x60] sm:$0xff]  ;;  %v2011_v54 = vld [vmem:[%s4031_s29 + $0x70] sm:$0xff]  ;;  %s4936_s6 = sld [smem:[#allocation54_spill]]  ;;  %s3022_s30 = scalar_lea.vmem %s4531_s7, 2048 }
 0x1ab   : > { %2176 = vmatprep.subr.mxu0 %v4143_v4  ;;  %2211 = vmatprep.subr.mxu1 %v4143_v4  ;;  %v1332_v47 = vld [vmem:[%s4932_s24 + $0x8] sm:$0xff]  ;;  %v1249_v50 = vadd.f32 %v2000_v44, %v1247_v45  ;;  %v1416_v53 = vld [vmem:[%s766_s17] sm:$0xff]  ;;  %p3023_p5 = scmp.ne.s32.totalorder %s4531_s7, %s3022_s30  ;;  %p3029_p6 = scmp.lt.s32.totalorder %s4531_s7, %s3027_s21 }
 0x1ac   : > { %2177 = vmatpush3.msra.mxu0 %v4143_v4  ;;  %2212 = vmatpush3.msra.mxu1 %v4143_v4  ;;  %v1334_v51 = vadd.f32 %v2004_v46, %v1332_v47  ;;  %v1501_v55 = vld [vmem:[%s775_s10] sm:$0xff]  ;;  %v2008_v56 = vld [vmem:[%s4031_s29 + $0x68] sm:$0xff]  ;;  %v1418_v60 = vadd.f32 %v2007_v52, %v1416_v53  ;;  %p3030_p2 = scmp.lt.s32.totalorder %s3028_s20, %s3022_s30 }
 0x1ad   : > { %2178 = vmatprep.subr.mxu0 %v4152_v5  ;;  %2213 = vmatprep.subr.mxu1 %v4152_v5  ;;  %v1417_v57 = vld [vmem:[%s766_s17 + $0x8] sm:$0xff]  ;;  %v1503_v61 = vadd.f32 %v2011_v54, %v1501_v55  ;;  %p3024_p13 = pnand %p3023_p5, %p4939_p0 }
 0x1ae   : > { %2179 = vmatpush3.msra.mxu0 %v4152_v5  ;;  %2214 = vmatpush3.msra.mxu1 %v4152_v5  ;;  %v1502_v59 = vld [vmem:[%s775_s10 + $0x8] sm:$0xff]  ;;  %v1419_v62 = vadd.f32 %v2008_v56, %v1417_v57  ;;  %p3031_p7 = por %p3030_p2, %p3029_p6 }
 0x1af   : > { %2180 = vmatprep.subr.mxu0 %v4161_v6  ;;  %2215 = vmatprep.subr.mxu1 %v4161_v6  ;;  %v1504_v63 = vadd.f32 %v2012_v58, %v1502_v59  ;;  %p3025_p1 = pneg %p3024_p13 }
 0x1b0   : > { %2181 = vmatpush3.msra.mxu0 %v4161_v6  ;;  %2216 = vmatpush3.msra.mxu1 %v4161_v6  ;;  %s2018_s1 = sshll.u32 %s4936_s6, 5 }
 0x1b1   : > { %2182 = vmatprep.subr.mxu0 %v4170_v7  ;;  %2217 = vmatprep.subr.mxu1 %v4170_v7  ;;  %s1599_s23 = sadd.s32 %s2023_s25, %s2018_s1  ;;  %p3032_p11 = pnand %p3031_p7, %p3025_p1 }
 0x1b2   : > { %2183 = vmatpush3.msra.mxu0 %v4170_v7  ;;  %2218 = vmatpush3.msra.mxu1 %v4170_v7  ;;  %s2019_s10 = sshll.u32 %s1599_s23, 7 }
 0x1b3   : > { %2184 = vmatprep.subr.mxu0 %v4179_v8  ;;  %2219 = vmatprep.subr.mxu1 %v4179_v8  ;;  %s4529_s19 = scalar_lea.hbm %s4937_s12, %s2019_s10 }
 0x1b4   : > { %2185 = vmatpush3.msra.mxu0 %v4179_v8  ;;  %2220 = vmatpush3.msra.mxu1 %v4179_v8 }
 0x1b5   : > { %2186 = vmatprep.subr.mxu0 %v4188_v9  ;;  %2221 = vmatprep.subr.mxu1 %v4188_v9 }
 0x1b6   : > { %2187 = vmatpush3.msra.mxu0 %v4188_v9  ;;  %2222 = vmatpush3.msra.mxu1 %v4188_v9 }
 0x1b7   : > { %2188 = vmatprep.subr.mxu0 %v4197_v10  ;;  %2223 = vmatprep.subr.mxu1 %v4197_v10 }
 0x1b8   : > { %2189 = vmatpush3.msra.mxu0 %v4197_v10  ;;  %2224 = vmatpush3.msra.mxu1 %v4197_v10 }
 0x1b9   : > { %2190 = vmatprep.subr.mxu0 %v4206_v11  ;;  %2225 = vmatprep.subr.mxu1 %v4206_v11 }
 0x1ba   : > { %2191 = vmatpush3.msra.mxu0 %v4206_v11  ;;  %2226 = vmatpush3.msra.mxu1 %v4206_v11 }
 0x1bb   : > { %2192 = vmatprep.subr.mxu0 %v4215_v12  ;;  %2227 = vmatprep.subr.mxu1 %v4215_v12 }
 0x1bc   : > { %2193 = vmatpush3.msra.mxu0 %v4215_v12  ;;  %2228 = vmatpush3.msra.mxu1 %v4215_v12 }
 0x1bd   : > { %2194 = vmatprep.subr.mxu0 %v4224_v13  ;;  %2229 = vmatprep.subr.mxu1 %v4224_v13 }
 0x1be   : > { %2195 = vmatpush3.msra.mxu0 %v4224_v13  ;;  %2230 = vmatpush3.msra.mxu1 %v4224_v13 }
 0x1bf   : > { %2196 = vmatprep.subr.mxu0 %v4231_v14  ;;  %2231 = vmatprep.subr.mxu1 %v4231_v14 }
 0x1c0   : > { %2197 = vmatpush3.msra.mxu0 %v4231_v14  ;;  %2232 = vmatpush3.msra.mxu1 %v4231_v14 }
 0x1c1   : > { %2198 = vmatprep.subr.mxu0 %v4254_v23  ;;  %2233 = vmatprep.subr.mxu1 %v4254_v23 }
 0x1c2   : > { %2199 = vmatpush3.msra.mxu0 %v4254_v23  ;;  %2234 = vmatpush3.msra.mxu1 %v4254_v23 }
 0x1c3   : > { %2201 = vmatmul.mubr.f32.vlgmr.msra.gmra.mxu0 %v903_v26  ;;  %2236 = vmatmul.mubr.f32.vlgmr.msra.gmra.mxu1 %v994_v27 }
 0x1c4   : > { %2238 = vmatprep.subr.mxu0 %v4111_v0  ;;  %2273 = vmatprep.subr.mxu1 %v4111_v0 }
 0x1c5   : > { %2239 = vmatpush3.msra.mxu0 %v4111_v0  ;;  %2274 = vmatpush3.msra.mxu1 %v4111_v0 }
 0x1c6   : > { %2240 = vmatprep.subr.mxu0 %v4116_v1  ;;  %2275 = vmatprep.subr.mxu1 %v4116_v1 }
 0x1c7   : > { %2241 = vmatpush3.msra.mxu0 %v4116_v1  ;;  %2276 = vmatpush3.msra.mxu1 %v4116_v1 }
 0x1c8   : > { %2242 = vmatprep.subr.mxu0 %v4125_v2  ;;  %2277 = vmatprep.subr.mxu1 %v4125_v2 }
 0x1c9   : > { %2243 = vmatpush3.msra.mxu0 %v4125_v2  ;;  %2278 = vmatpush3.msra.mxu1 %v4125_v2 }
 0x1ca   : > { %2244 = vmatprep.subr.mxu0 %v4134_v3  ;;  %2279 = vmatprep.subr.mxu1 %v4134_v3 }
 0x1cb   : > { %2245 = vmatpush3.msra.mxu0 %v4134_v3  ;;  %2280 = vmatpush3.msra.mxu1 %v4134_v3 }
 0x1cc   : > { %2246 = vmatprep.subr.mxu0 %v4143_v4  ;;  %2281 = vmatprep.subr.mxu1 %v4143_v4 }
 0x1cd   : > { %2247 = vmatpush3.msra.mxu0 %v4143_v4  ;;  %2282 = vmatpush3.msra.mxu1 %v4143_v4 }
 0x1ce   : > { %2248 = vmatprep.subr.mxu0 %v4152_v5  ;;  %2283 = vmatprep.subr.mxu1 %v4152_v5 }
 0x1cf   : > { %2249 = vmatpush3.msra.mxu0 %v4152_v5  ;;  %2284 = vmatpush3.msra.mxu1 %v4152_v5 }
 0x1d0   : > { %2250 = vmatprep.subr.mxu0 %v4161_v6  ;;  %2285 = vmatprep.subr.mxu1 %v4161_v6 }
 0x1d1   : > { %2251 = vmatpush3.msra.mxu0 %v4161_v6  ;;  %2286 = vmatpush3.msra.mxu1 %v4161_v6 }
 0x1d2   : > { %2252 = vmatprep.subr.mxu0 %v4170_v7  ;;  %2287 = vmatprep.subr.mxu1 %v4170_v7 }
 0x1d3   : > { %2253 = vmatpush3.msra.mxu0 %v4170_v7  ;;  %2288 = vmatpush3.msra.mxu1 %v4170_v7 }
 0x1d4   : > { %2254 = vmatprep.subr.mxu0 %v4179_v8  ;;  %2289 = vmatprep.subr.mxu1 %v4179_v8 }
 0x1d5   : > { %2255 = vmatpush3.msra.mxu0 %v4179_v8  ;;  %2290 = vmatpush3.msra.mxu1 %v4179_v8 }
 0x1d6   : > { %2256 = vmatprep.subr.mxu0 %v4188_v9  ;;  %2291 = vmatprep.subr.mxu1 %v4188_v9 }
 0x1d7   : > { %2257 = vmatpush3.msra.mxu0 %v4188_v9  ;;  %2292 = vmatpush3.msra.mxu1 %v4188_v9 }
 0x1d8   : > { %2258 = vmatprep.subr.mxu0 %v4197_v10  ;;  %2293 = vmatprep.subr.mxu1 %v4197_v10 }
 0x1d9   : > { %2259 = vmatpush3.msra.mxu0 %v4197_v10  ;;  %2294 = vmatpush3.msra.mxu1 %v4197_v10 }
 0x1da   : > { %2260 = vmatprep.subr.mxu0 %v4206_v11  ;;  %2295 = vmatprep.subr.mxu1 %v4206_v11 }
 0x1db   : > { %2261 = vmatpush3.msra.mxu0 %v4206_v11  ;;  %2296 = vmatpush3.msra.mxu1 %v4206_v11 }
 0x1dc   : > { %2262 = vmatprep.subr.mxu0 %v4215_v12  ;;  %2297 = vmatprep.subr.mxu1 %v4215_v12 }
 0x1dd   : > { %2263 = vmatpush3.msra.mxu0 %v4215_v12  ;;  %2298 = vmatpush3.msra.mxu1 %v4215_v12 }
 0x1de   : > { %2264 = vmatprep.subr.mxu0 %v4224_v13  ;;  %2299 = vmatprep.subr.mxu1 %v4224_v13 }
 0x1df   : > { %2265 = vmatpush3.msra.mxu0 %v4224_v13  ;;  %2300 = vmatpush3.msra.mxu1 %v4224_v13 }
 0x1e0   : > { %2266 = vmatprep.subr.mxu0 %v4231_v14  ;;  %2301 = vmatprep.subr.mxu1 %v4231_v14 }
 0x1e1   : > { %2267 = vmatpush3.msra.mxu0 %v4231_v14  ;;  %2302 = vmatpush3.msra.mxu1 %v4231_v14 }
 0x1e2   : > { %2268 = vmatprep.subr.mxu0 %v4254_v23  ;;  %2303 = vmatprep.subr.mxu1 %v4254_v23 }
 0x1e3   : > { %2269 = vmatpush3.msra.mxu0 %v4254_v23  ;;  %2270 = vmatprep.mubr.f32.mxu0 %v1078_v36 }
 0x1e4   : > { %2304 = vmatpush3.msra.mxu1 %v4254_v23  ;;  %2305 = vmatprep.mubr.f32.mxu1 %v1163_v37 }
 0x1e5   : > { %2271 = vmatmul.mubr.f32.vlgmr.msra.gmra.mxu0 %v1079_v38  ;;  %2306 = vmatmul.mubr.f32.vlgmr.msra.gmra.mxu1 %v1164_v39 }
 0x1e6   : > { %2308 = vmatprep.subr.mxu0 %v4111_v0  ;;  %2343 = vmatprep.subr.mxu1 %v4111_v0 }
 0x1e7   : > { %2309 = vmatpush3.msra.mxu0 %v4111_v0  ;;  %2344 = vmatpush3.msra.mxu1 %v4111_v0 }
 0x1e8   : > { %2310 = vmatprep.subr.mxu0 %v4116_v1  ;;  %2345 = vmatprep.subr.mxu1 %v4116_v1 }
 0x1e9   : > { %2311 = vmatpush3.msra.mxu0 %v4116_v1  ;;  %2346 = vmatpush3.msra.mxu1 %v4116_v1 }
 0x1ea   : > { %2312 = vmatprep.subr.mxu0 %v4125_v2  ;;  %2347 = vmatprep.subr.mxu1 %v4125_v2 }
 0x1eb   : > { %2313 = vmatpush3.msra.mxu0 %v4125_v2  ;;  %2348 = vmatpush3.msra.mxu1 %v4125_v2 }
 0x1ec   : > { %2314 = vmatprep.subr.mxu0 %v4134_v3  ;;  %2349 = vmatprep.subr.mxu1 %v4134_v3 }
 0x1ed   : > { %2315 = vmatpush3.msra.mxu0 %v4134_v3  ;;  %2350 = vmatpush3.msra.mxu1 %v4134_v3 }
 0x1ee   : > { %2316 = vmatprep.subr.mxu0 %v4143_v4  ;;  %2351 = vmatprep.subr.mxu1 %v4143_v4 }
 0x1ef   : > { %2317 = vmatpush3.msra.mxu0 %v4143_v4  ;;  %2352 = vmatpush3.msra.mxu1 %v4143_v4 }
 0x1f0   : > { %2318 = vmatprep.subr.mxu0 %v4152_v5  ;;  %2353 = vmatprep.subr.mxu1 %v4152_v5 }
 0x1f1   : > { %2319 = vmatpush3.msra.mxu0 %v4152_v5  ;;  %2354 = vmatpush3.msra.mxu1 %v4152_v5 }
 0x1f2   : > { %2320 = vmatprep.subr.mxu0 %v4161_v6  ;;  %2355 = vmatprep.subr.mxu1 %v4161_v6 }
 0x1f3   : > { %2321 = vmatpush3.msra.mxu0 %v4161_v6  ;;  %2356 = vmatpush3.msra.mxu1 %v4161_v6 }
 0x1f4   : > { %2322 = vmatprep.subr.mxu0 %v4170_v7  ;;  %2357 = vmatprep.subr.mxu1 %v4170_v7 }
 0x1f5   : > { %2323 = vmatpush3.msra.mxu0 %v4170_v7  ;;  %2358 = vmatpush3.msra.mxu1 %v4170_v7 }
 0x1f6   : > { %2324 = vmatprep.subr.mxu0 %v4179_v8  ;;  %2359 = vmatprep.subr.mxu1 %v4179_v8 }
 0x1f7   : > { %2325 = vmatpush3.msra.mxu0 %v4179_v8  ;;  %2360 = vmatpush3.msra.mxu1 %v4179_v8 }
 0x1f8   : > { %2326 = vmatprep.subr.mxu0 %v4188_v9  ;;  %2361 = vmatprep.subr.mxu1 %v4188_v9 }
 0x1f9   : > { %2327 = vmatpush3.msra.mxu0 %v4188_v9  ;;  %2362 = vmatpush3.msra.mxu1 %v4188_v9 }
 0x1fa   : > { %2328 = vmatprep.subr.mxu0 %v4197_v10  ;;  %2363 = vmatprep.subr.mxu1 %v4197_v10 }
 0x1fb   : > { %2329 = vmatpush3.msra.mxu0 %v4197_v10  ;;  %2364 = vmatpush3.msra.mxu1 %v4197_v10 }
 0x1fc   : > { %2330 = vmatprep.subr.mxu0 %v4206_v11  ;;  %2365 = vmatprep.subr.mxu1 %v4206_v11 }
 0x1fd   : > { %2331 = vmatpush3.msra.mxu0 %v4206_v11  ;;  %2366 = vmatpush3.msra.mxu1 %v4206_v11 }
 0x1fe   : > { %2332 = vmatprep.subr.mxu0 %v4215_v12  ;;  %2367 = vmatprep.subr.mxu1 %v4215_v12 }
 0x1ff   : > { %2333 = vmatpush3.msra.mxu0 %v4215_v12  ;;  %2368 = vmatpush3.msra.mxu1 %v4215_v12 }
 0x200   : > { %2334 = vmatprep.subr.mxu0 %v4224_v13  ;;  %2369 = vmatprep.subr.mxu1 %v4224_v13 }
 0x201   : > { %2335 = vmatpush3.msra.mxu0 %v4224_v13  ;;  %2370 = vmatpush3.msra.mxu1 %v4224_v13 }
 0x202   : > { %2336 = vmatprep.subr.mxu0 %v4231_v14  ;;  %2371 = vmatprep.subr.mxu1 %v4231_v14 }
 0x203   : > { %2337 = vmatpush3.msra.mxu0 %v4231_v14  ;;  %2372 = vmatpush3.msra.mxu1 %v4231_v14 }
 0x204   : > { %2338 = vmatprep.subr.mxu0 %v4254_v23  ;;  %2373 = vmatprep.subr.mxu1 %v4254_v23 }
 0x205   : > { %2339 = vmatpush3.msra.mxu0 %v4254_v23  ;;  %2340 = vmatprep.mubr.f32.mxu0 %v1248_v48 }
 0x206   : > { %2374 = vmatpush3.msra.mxu1 %v4254_v23  ;;  %2375 = vmatprep.mubr.f32.mxu1 %v1333_v49 }
 0x207   : > { %2341 = vmatmul.mubr.f32.vlgmr.msra.gmra.mxu0 %v1249_v50  ;;  %2376 = vmatmul.mubr.f32.vlgmr.msra.gmra.mxu1 %v1334_v51 }
 0x208   : > { %2378 = vmatprep.subr.mxu0 %v4111_v0  ;;  %2413 = vmatprep.subr.mxu1 %v4111_v0 }
 0x209   : > { %2379 = vmatpush3.msra.mxu0 %v4111_v0  ;;  %2414 = vmatpush3.msra.mxu1 %v4111_v0  ;;  %v1986_v0 = vld [vmem:[%s4933_s4] ss:$0 sm:$0xff] }
 0x20a   : > { %2380 = vmatprep.subr.mxu0 %v4116_v1  ;;  %2415 = vmatprep.subr.mxu1 %v4116_v1 }
 0x20b   : > { %2381 = vmatpush3.msra.mxu0 %v4116_v1  ;;  %2416 = vmatpush3.msra.mxu1 %v4116_v1 }
 0x20c   : > { %2382 = vmatprep.subr.mxu0 %v4125_v2  ;;  %2417 = vmatprep.subr.mxu1 %v4125_v2 }
 0x20d   : > { %2383 = vmatpush3.msra.mxu0 %v4125_v2  ;;  %2418 = vmatpush3.msra.mxu1 %v4125_v2 }
 0x20e   : > { %2384 = vmatprep.subr.mxu0 %v4134_v3  ;;  %2419 = vmatprep.subr.mxu1 %v4134_v3 }
 0x20f   : > { %2385 = vmatpush3.msra.mxu0 %v4134_v3  ;;  %2420 = vmatpush3.msra.mxu1 %v4134_v3 }
 0x210   : > { %2386 = vmatprep.subr.mxu0 %v4143_v4  ;;  %2421 = vmatprep.subr.mxu1 %v4143_v4 }
 0x211   : > { %2387 = vmatpush3.msra.mxu0 %v4143_v4  ;;  %2422 = vmatpush3.msra.mxu1 %v4143_v4 }
 0x212   : > { %2388 = vmatprep.subr.mxu0 %v4152_v5  ;;  %2423 = vmatprep.subr.mxu1 %v4152_v5 }
 0x213   : > { %2389 = vmatpush3.msra.mxu0 %v4152_v5  ;;  %2424 = vmatpush3.msra.mxu1 %v4152_v5 }
 0x214   : > { %2390 = vmatprep.subr.mxu0 %v4161_v6  ;;  %2425 = vmatprep.subr.mxu1 %v4161_v6 }
 0x215   : > { %2391 = vmatpush3.msra.mxu0 %v4161_v6  ;;  %2426 = vmatpush3.msra.mxu1 %v4161_v6 }
 0x216   : > { %2392 = vmatprep.subr.mxu0 %v4170_v7  ;;  %2427 = vmatprep.subr.mxu1 %v4170_v7 }
 0x217   : > { %2393 = vmatpush3.msra.mxu0 %v4170_v7  ;;  %2428 = vmatpush3.msra.mxu1 %v4170_v7 }
 0x218   : > { %2394 = vmatprep.subr.mxu0 %v4179_v8  ;;  %2429 = vmatprep.subr.mxu1 %v4179_v8 }
 0x219   : > { %2395 = vmatpush3.msra.mxu0 %v4179_v8  ;;  %2430 = vmatpush3.msra.mxu1 %v4179_v8 }
 0x21a   : > { %2396 = vmatprep.subr.mxu0 %v4188_v9  ;;  %2431 = vmatprep.subr.mxu1 %v4188_v9 }
 0x21b   : > { %2397 = vmatpush3.msra.mxu0 %v4188_v9  ;;  %2432 = vmatpush3.msra.mxu1 %v4188_v9 }
 0x21c   : > { %2398 = vmatprep.subr.mxu0 %v4197_v10  ;;  %2433 = vmatprep.subr.mxu1 %v4197_v10 }
 0x21d   : > { %2399 = vmatpush3.msra.mxu0 %v4197_v10  ;;  %2434 = vmatpush3.msra.mxu1 %v4197_v10 }
 0x21e   : > { %2400 = vmatprep.subr.mxu0 %v4206_v11  ;;  %2435 = vmatprep.subr.mxu1 %v4206_v11 }
 0x21f   : > { %2401 = vmatpush3.msra.mxu0 %v4206_v11  ;;  %2436 = vmatpush3.msra.mxu1 %v4206_v11 }
 0x220   : > { %2402 = vmatprep.subr.mxu0 %v4215_v12  ;;  %2437 = vmatprep.subr.mxu1 %v4215_v12 }
 0x221   : > { %2403 = vmatpush3.msra.mxu0 %v4215_v12  ;;  %2438 = vmatpush3.msra.mxu1 %v4215_v12 }
 0x222   : > { %2404 = vmatprep.subr.mxu0 %v4224_v13  ;;  %2439 = vmatprep.subr.mxu1 %v4224_v13 }
 0x223   : > { %2405 = vmatpush3.msra.mxu0 %v4224_v13  ;;  %2440 = vmatpush3.msra.mxu1 %v4224_v13 }
 0x224   : > { %2406 = vmatprep.subr.mxu0 %v4231_v14  ;;  %2441 = vmatprep.subr.mxu1 %v4231_v14 }
 0x225   : > { %2407 = vmatpush3.msra.mxu0 %v4231_v14  ;;  %2442 = vmatpush3.msra.mxu1 %v4231_v14 }
 0x226   : > { %2408 = vmatprep.subr.mxu0 %v4254_v23  ;;  %2443 = vmatprep.subr.mxu1 %v4254_v23 }
 0x227   : > { %2409 = vmatpush3.msra.mxu0 %v4254_v23  ;;  %2410 = vmatprep.mubr.f32.mxu0 %v1418_v60 }
 0x228   : > { %2444 = vmatpush3.msra.mxu1 %v4254_v23  ;;  %2445 = vmatprep.mubr.f32.mxu1 %v1503_v61 }
 0x229   : > { %2411 = vmatmul.mubr.f32.vlgmr.msra.gmra.mxu0 %v1419_v62  ;;  %2446 = vmatmul.mubr.f32.vlgmr.msra.gmra.mxu1 %v1504_v63 }
 0x283   : > { %v2202_v1 = vpop.f32.mrf.mxu0  ;;  %v2237_v2 = vpop.f32.mrf.mxu1 }
 0x284   : > { %v982_v3 = vadd.f32 %v2202_v1, %v1986_v0  ;;  %v1067_v4 = vadd.f32 %v2237_v2, %v1986_v0 }
 0x285   : > { %v976_v5 = vpop.f32.mrf.mxu0  ;;  %v1061_v6 = vpop.f32.mrf.mxu1 }
 0x286   : > { %987 = vst.msk [vmem:[%s4497_s15 + $0x8] sm:$0xff] %vm985_vm0, %v982_v3  ;;  %1990 = vst.msk [vmem:[%s4497_s15 + $0x18] sm:$0xff] %vm985_vm0, %v1067_v4  ;;  %v977_v7 = vadd.f32 %v1986_v0, %v976_v5  ;;  %v1062_v8 = vadd.f32 %v1986_v0, %v1061_v6 }
 0x288   : > { %986 = vst.msk [vmem:[%s4497_s15] sm:$0xff] %vm985_vm0, %v977_v7  ;;  %1989 = vst.msk [vmem:[%s4497_s15 + $0x10] sm:$0xff] %vm985_vm0, %v1062_v8 }
 0x2a5   : > { %v2272_v9 = vpop.f32.mrf.mxu0  ;;  %v2307_v10 = vpop.f32.mrf.mxu1 }
 0x2a6   : > { %v1152_v11 = vadd.f32 %v2272_v9, %v1986_v0  ;;  %v1237_v12 = vadd.f32 %v2307_v10, %v1986_v0 }
 0x2a7   : > { %v1146_v13 = vpop.f32.mrf.mxu0  ;;  %v1231_v14 = vpop.f32.mrf.mxu1 }
 0x2a8   : > { %1994 = vst.msk [vmem:[%s4497_s15 + $0x28] sm:$0xff] %vm985_vm0, %v1152_v11  ;;  %1998 = vst.msk [vmem:[%s4497_s15 + $0x38] sm:$0xff] %vm985_vm0, %v1237_v12  ;;  %v1147_v15 = vadd.f32 %v1986_v0, %v1146_v13  ;;  %v1232_v16 = vadd.f32 %v1986_v0, %v1231_v14 }
 0x2aa   : > { %1993 = vst.msk [vmem:[%s4497_s15 + $0x20] sm:$0xff] %vm985_vm0, %v1147_v15  ;;  %1997 = vst.msk [vmem:[%s4497_s15 + $0x30] sm:$0xff] %vm985_vm0, %v1232_v16 }
 0x2c7   : > { %v2342_v17 = vpop.f32.mrf.mxu0  ;;  %v2377_v18 = vpop.f32.mrf.mxu1 }
 0x2c8   : > { %v1322_v19 = vadd.f32 %v2342_v17, %v1986_v0  ;;  %v1407_v20 = vadd.f32 %v2377_v18, %v1986_v0 }
 0x2c9   : > { %v1316_v21 = vpop.f32.mrf.mxu0  ;;  %v1401_v22 = vpop.f32.mrf.mxu1 }
 0x2ca   : > { %2002 = vst.msk [vmem:[%s4497_s15 + $0x48] sm:$0xff] %vm985_vm0, %v1322_v19  ;;  %2006 = vst.msk [vmem:[%s4497_s15 + $0x58] sm:$0xff] %vm985_vm0, %v1407_v20  ;;  %v1317_v23 = vadd.f32 %v1986_v0, %v1316_v21  ;;  %v1402_v24 = vadd.f32 %v1986_v0, %v1401_v22 }
 0x2cc   : > { %2001 = vst.msk [vmem:[%s4497_s15 + $0x40] sm:$0xff] %vm985_vm0, %v1317_v23  ;;  %2005 = vst.msk [vmem:[%s4497_s15 + $0x50] sm:$0xff] %vm985_vm0, %v1402_v24 }
 0x2e9   : > { %v2412_v25 = vpop.f32.mrf.mxu0  ;;  %v2447_v26 = vpop.f32.mrf.mxu1 }
 0x2ea   : > { %v1492_v27 = vadd.f32 %v2412_v25, %v1986_v0  ;;  %v1577_v28 = vadd.f32 %v2447_v26, %v1986_v0 }
 0x2eb   : > { %v1486_v29 = vpop.f32.mrf.mxu0  ;;  %v1571_v30 = vpop.f32.mrf.mxu1 }
 0x2ec   : > { %2010 = vst.msk [vmem:[%s4497_s15 + $0x68] sm:$0xff] %vm985_vm0, %v1492_v27  ;;  %2014 = vst.msk [vmem:[%s4497_s15 + $0x78] sm:$0xff] %vm985_vm0, %v1577_v28  ;;  %v1487_v31 = vadd.f32 %v1986_v0, %v1486_v29  ;;  %v1572_v32 = vadd.f32 %v1986_v0, %v1571_v30 }
 0x2ee   : > { %2009 = vst.msk [vmem:[%s4497_s15 + $0x60] sm:$0xff] %vm985_vm0, %v1487_v31  ;;  %2013 = vst.msk [vmem:[%s4497_s15 + $0x70] sm:$0xff] %vm985_vm0, %v1572_v32 }
 0x2ef   : > { %3035 = shalt.err (!%p3032_p11)
}
 0x2f0   : > { %s3036_s2 = scalar_lea.hbm %s4529_s19, 2048  ;;  %s3040_s17 = scalar_lea.hbm %s4938_s0, 8192 }
 0x2f1   : > { %p3037_p4 = scmp.ne.s32.totalorder %s4529_s19, %s3036_s2  ;;  %p3041_p3 = scmp.lt.s32.totalorder %s4529_s19, %s4938_s0 }
 0x2f2   : > { %p3042_p12 = scmp.lt.s32.totalorder %s3040_s17, %s3036_s2 }
 0x2f3   : > { %p3038_p10 = pnand %p3037_p4, %p4939_p0 }
 0x2f4   : > { %p3043_p8 = por %p3042_p12, %p3041_p3 }
 0x2f5   : > { %p3039_p9 = pneg %p3038_p10 }
 0x2f7   : > { %p3044_p5 = pnand %p3043_p8, %p3039_p9 }
 0x2f9   : > { %3047 = shalt.err (!%p3044_p5)
}
 0x2fa   : > { %s3357_s11 = smov 128   ;;  %s3358_s15 = smov 8  }
 0x2fb   : > { %2466 = dma.vmem_to_hbm [thread:$0]  (%p4939_p0), %s4531_s7, 2048, %s4529_s19, %s1584_s28, %s3357_s11, %s3357_s11, %s3358_s15  }
 0x2fc PF: > { %s4940_s18 = sld [smem:[#allocation50_spill]]  ;;  %p2501_p13 = scmp.ge.s32.totalorder %s4816_s16, 2 }
 0x2fd   : > { %p4941_p1 = scmp.ne.s32.totalorder %s4860_s26, 0 }
 0x2ff   : > { %p2497_p6 = pnand %p2501_p13, %p4941_p1 }
 0x301   : > { %p2498_p2 = pneg %p2497_p6 }
 0x302   : > { %s1617_s6 = sand.u32 1, %s4940_s18  }
 0x303   : > { %s1618_s25 = scalar_lea.sflag [#allocation4], %s1617_s6 }
 0x304   : > { %3213 = dma.done.wait (%p2498_p2), %s1618_s25, 2048  }
 0x305   : > { %3215 = vsyncadd (%p2498_p2), %s1618_s25, 4294965248  ;;  %s4746_s10 = sadd.s32 1, %s4816_s16   ;;  %s4942_s17 = sld [smem:[#allocation29_spill]] }
 0x306   : > { %s4943_s18 = sld [smem:[#allocation36_spill]]  ;;  %p4571_p0 = scmp.ge.s32.totalorder %s4746_s10, 6  }
 0x307   : > { %s4944_s20 = sld [smem:[#allocation31_spill]]  ;;  %s4960_s19 = smov %s5004_s27 }
 0x308   : > { %s4945_s21 = sld [smem:[#allocation32_spill]]  ;;  %s4968_s25 = smov %s5002_s8 }
 0x309   : > { %s4946_s22 = sld [smem:[#allocation30_spill]] }
 0x30a   : > { %s4947_s23 = sld [smem:[#allocation33_spill]] }
 0x30b   : > { %s4948_s24 = sld [smem:[#allocation38_spill]] }
 0x30c   : > { %s4949_s26 = sld [smem:[#allocation39_spill]] }
 0x30d   : > { %s4950_s3 = sld [smem:[#allocation34_spill]] }
 0x30e   : > { %s4951_s28 = sld [smem:[#allocation63_spill]] }
 0x30f   : > { %s4952_s29 = sld [smem:[#allocation41_spill]] }
 0x310   : > { %s4953_s30 = sld [smem:[#allocation42_spill]] }
 0x311   : > { %s4954_s12 = sld [smem:[#allocation68_spill]] }
 0x312   : > { %s4955_s5 = scalar_select %p4571_p0, 1, 0 }
 0x313   : > { %s4957_s13 = sld [smem:[#allocation35_spill]]  ;;  %s4972_s27 = smov %s4950_s3 }
 0x314   : > { %4956 = sst [smem:[#allocation34_spill]] %s4955_s5 }
 0x315   : > { %s4958_s14 = sld [smem:[#allocation43_spill]] }
 0x316   : > { %s4959_s15 = sld [smem:[#allocation62_spill]] }
 0x317   : > { %s4961_s1 = sld [smem:[#allocation45_spill]] }
 0x318   : > { %s4962_s11 = sld [smem:[#allocation46_spill]] }
 0x319   : > { %s4963_s7 = sld [smem:[#allocation67_spill]] }
 0x31a   : > { %s4964_s9 = sld [smem:[#allocation48_spill]] }
 0x31b   : > { %s4965_s2 = sld [smem:[#allocation49_spill]] }
 0x31c   : > { %4966 = sst [smem:[#allocation28_spill]] %s4948_s24 }
 0x31d   : > { %s4967_s6 = sld [smem:[#allocation60_spill]] }
 0x31e   : > { %s4969_s4 = sld [smem:[#allocation51_spill]] }
 0x31f   : > { %4970 = sst [smem:[#allocation29_spill]] %s4949_s26 }
 0x320   : > { %s4971_s10 = sld [smem:[#allocation52_spill]] }
 0x321   : > { %s4973_s0 = sld [smem:[#allocation64_spill]] }
 0x322   : > { %s4974_s5 = sld [smem:[#allocation55_spill]] }
 0x323   : > { %s4975_s16 = sld [smem:[#allocation56_spill]] }
 0x324   : > { %s4976_s3 = sld [smem:[#allocation58_spill]] }
 0x325   : > { %s4977_s24 = sld [smem:[#allocation59_spill]] }
 0x326   : > { %s4978_s8 = sld [smem:[#allocation57_spill]] }
 0x327   : > { %4980 = sst [smem:[#allocation30_spill]] %s4961_s1 }
 0x328   : > { %4981 = sst [smem:[#allocation31_spill]] %s4962_s11 }
 0x329   : > { %4982 = sst [smem:[#allocation32_spill]] %s4963_s7  ;;  %s4986_s7 = smov %s4974_s5 }
 0x32a   : > { %4983 = sst [smem:[#allocation33_spill]] %s4965_s2  ;;  %s4984_s2 = smov %s4971_s10 }
 0x32b   : > { %4985 = sst [smem:[#allocation34_spill]] %s4973_s0  ;;  %s4987_s5 = smov %s4975_s16 }
 0x32c   : > { %s4988_s1 = smov %s4977_s24  ;;  %s4989_s11 = sadd.s32 1, %s4978_s8  }
 0x32d   : > { %4990 = sst [smem:[#allocation35_spill]] %s4989_s11  ;;  %38 = sbr.rel (!%p4571_p0) target bundleno = 45 (0x2d), region = 219 }
 0x332   :  { %1623 = vsyncpa [#allocation3], 1 }
 0x333   :  { %1625 = vsyncpa [#allocation3 + $0x1], 1 }
 0x334   :  { %1626 = vsyncpa [#allocation6], 1 }
 0x335   :  { %1628 = vsyncpa [#allocation6 + $0x1], 1 }
 0x336   :  { %1629 = vsyncpa [#allocation9], 1 }
 0x337   :  { %1631 = vsyncpa [#allocation9 + $0x1], 1 }
 0x338   :  { %1632 = vsyncpa [#allocation12], 1 }
 0x339   :  { %1634 = vsyncpa [#allocation12 + $0x1], 1 }
 0x33a   :  { %1635 = vsyncpa [#allocation15], 1 }
 0x33b   :  { %1637 = vsyncpa [#allocation15 + $0x1], 1 }
 0x33c   :  { %1638 = vsyncpa [#allocation4], 1 }
 0x33d   :  { %1640 = vsyncpa [#allocation4 + $0x1], 1 }

</bundles_post_ra>
